<compile_context>
chip_gen: v7x
topology: tpu7x:2x2x1
jax: 0.10.0
libtpu: 0.0.40
codegen_flags: <defaults>
</compile_context>

<pallas_src>
import functools
import math

import jax
import jax.numpy as jnp
from jax.experimental import pallas as pl
from jax.experimental.pallas import tpu as pltpu

LANE = 128


def _round_up(x, m):
    return ((x + m - 1) // m) * m


def _pick_tile_m(B):
    """256 for large batches (MXU-filling); otherwise split B across 2 tiles."""
    if B >= 512:
        return 256
    half = _round_up(max((B + 1) // 2, 1), 8)
    return min(half, 256)


def _mlp_kernel(x_ref,
                w1_ref, b1_ref,
                w2_ref, b2_ref,
                w3_ref, b3_ref,
                w4_ref, b4_ref,
                o_ref):
    """Fused 4-layer MLP. bf16 operands on the MXU, f32 accumulation/activations."""
    x = x_ref[...].astype(jnp.bfloat16)                                     # [tm, 784]

    h = jnp.dot(x, w1_ref[...], preferred_element_type=jnp.float32) + b1_ref[...]
    h = jnp.maximum(h, 0.0).astype(jnp.bfloat16)

    h = jnp.dot(h, w2_ref[...], preferred_element_type=jnp.float32) + b2_ref[...]
    h = jnp.maximum(h, 0.0).astype(jnp.bfloat16)

    h = jnp.dot(h, w3_ref[...], preferred_element_type=jnp.float32) + b3_ref[...]
    h = jnp.maximum(h, 0.0).astype(jnp.bfloat16)

    h = jnp.dot(h, w4_ref[...], preferred_element_type=jnp.float32) + b4_ref[...]

    o_ref[...] = h.astype(o_ref.dtype)                                      # f32 [tm, 128]


def prepare_params(params):
    """One-time weight prep: cast to bf16 and pad the output features 10 -> 128.

    params: ((w1,b1),...,(w4,b4)) with W_i [in, out] (transposed vs. PyTorch),
    b_i [1, out], all f32.  Returns (flat_prepped_tuple, out_c).
    """
    (w1, b1), (w2, b2), (w3, b3), (w4, b4) = params
    out_c = w4.shape[1]
    out_pad = _round_up(out_c, LANE)                      # 10 -> 128

    w4p = jnp.pad(w4, ((0, 0), (0, out_pad - out_c)))
    b4p = jnp.pad(b4, ((0, 0), (0, out_pad - out_c)))

    prepped = (
        w1.astype(jnp.bfloat16), b1.astype(jnp.float32),
        w2.astype(jnp.bfloat16), b2.astype(jnp.float32),
        w3.astype(jnp.bfloat16), b3.astype(jnp.float32),
        w4p.astype(jnp.bfloat16), b4p.astype(jnp.float32),
    )
    return prepped, out_c


def _mlp_forward_impl(x, prepped, *, out_c, tile_m=None):
    """Runs the fused MLP kernel, tiling over the batch dimension only.

    x: [B, 784] f32 (unpadded).  prepped: output of prepare_params.
    Returns [B, out_c] f32.
    """
    w1, b1, w2, b2, w3, b3, w4, b4 = prepped
    B, in_c = x.shape
    out_pad = w4.shape[1]

    if tile_m is None:
        tile_m = _pick_tile_m(B)
    tile_m = min(tile_m, 512)           # stays well inside default scoped VMEM on v5e
    B_pad = _round_up(B, tile_m)

    # Only touch x if the batch actually needs padding (no-op for B % tile_m == 0).
    xp = x if B_pad == B else jnp.pad(x, ((0, B_pad - B), (0, 0)))

    grid = (B_pad // tile_m,)

    def full_spec(arr):
        n = arr.ndim
        return pl.BlockSpec(arr.shape, lambda i, n=n: (0,) * n)

    out_padded = pl.pallas_call(
        _mlp_kernel,
        out_shape=jax.ShapeDtypeStruct((B_pad, out_pad), jnp.float32),
        grid_spec=pl.GridSpec(
            grid=grid,
            in_specs=[
                pl.BlockSpec((tile_m, in_c), lambda i: (i, 0)),   # x tile (784 = full dim)
                full_spec(w1), full_spec(b1),
                full_spec(w2), full_spec(b2),
                full_spec(w3), full_spec(b3),
                full_spec(w4), full_spec(b4),
            ],
            out_specs=pl.BlockSpec((tile_m, out_pad), lambda i: (i, 0)),
        ),
        compiler_params=pltpu.CompilerParams(
            dimension_semantics=("parallel",),   # shard batch tiles across TCs (v7x)
        ),
    )(xp, w1, b1, w2, b2, w3, b3, w4, b4)

    return out_padded[:B, :out_c]


mlp_forward = jax.jit(_mlp_forward_impl, static_argnames=("out_c", "tile_m"))


def init_linear(key, in_f, out_f, dtype=jnp.float32):
    """nn.Linear default init U(-1/sqrt(in), 1/sqrt(in)); W stored [in, out], b [1, out]."""
    kw, kb = jax.random.split(key)
    bound = 1.0 / math.sqrt(in_f)
    w = jax.random.uniform(kw, (in_f, out_f), dtype, minval=-bound, maxval=bound)
    b = jax.random.uniform(kb, (1, out_f), dtype, minval=-bound, maxval=bound)
    return w, b


def reference_forward(x, params):
    """Pure-JAX reference with the same bf16-operand / f32-accumulate contract."""
    (w1, b1), (w2, b2), (w3, b3), (w4, b4) = params

    def mm(a, w):
        a16 = a.astype(jnp.bfloat16).astype(jnp.float32)
        w16 = w.astype(jnp.bfloat16).astype(jnp.float32)
        return jnp.dot(a16, w16)

    h = jnp.maximum(mm(x, w1) + b1, 0.0)
    h = jnp.maximum(mm(h, w2) + b2, 0.0)
    h = jnp.maximum(mm(h, w3) + b3, 0.0)
    return mm(h, w4) + b4


if __name__ == "__main__":
    in_c = 28 * 28   # 784
    out_c = 10
    batch = 256      # tile_m auto -> 128, grid=2 (keeps both v7x TensorCores busy)

    root = jax.random.PRNGKey(0)
    kx, k1, k2, k3, k4 = jax.random.split(root, 5)

    params = (
        init_linear(k1, in_c, 512),
        init_linear(k2, 512, 256),
        init_linear(k3, 256, 128),
        init_linear(k4, 128, out_c),
    )

    x = jax.random.normal(kx, (batch, in_c), jnp.float32)

    # One-time parameter prep (pad/cast weights), done outside the per-call path.
    prepped, out_c_prepped = prepare_params(params)
    prepped = jax.block_until_ready(prepped)

    out = mlp_forward(x, prepped, out_c=out_c_prepped)
    out = jax.block_until_ready(out)

    ref = reference_forward(x, params)
    assert out.shape == (batch, out_c), out.shape
    assert jnp.allclose(out, ref, atol=1e-2, rtol=1e-2), (
        "Pallas output mismatch vs. bf16 reference: "
        f"max abs err = {jnp.max(jnp.abs(out - ref))}")

    print("KERNEL_OK")
</pallas_src>

<mosaic_0001>
module attributes {stable_mosaic.version = 11 : i64} {
  func.func @_mlp_kernel(%arg0: i32, %arg1: memref<128x784xf32, #tpu.memory_space<vmem>>, %arg2: memref<784x512xbf16, #tpu.memory_space<vmem>>, %arg3: memref<1x512xf32, #tpu.memory_space<vmem>>, %arg4: memref<512x256xbf16, #tpu.memory_space<vmem>>, %arg5: memref<1x256xf32, #tpu.memory_space<vmem>>, %arg6: memref<256x128xbf16, #tpu.memory_space<vmem>>, %arg7: memref<1x128xf32, #tpu.memory_space<vmem>>, %arg8: memref<128x128xbf16, #tpu.memory_space<vmem>>, %arg9: memref<1x128xf32, #tpu.memory_space<vmem>>, %arg10: memref<128x128xf32, #tpu.memory_space<vmem>>) attributes {dimension_semantics = [#tpu.dimension_semantics<parallel>], iteration_bounds = array<i64: 2>, scalar_prefetch = 0 : i64, scratch_operands = 0 : i64, tpu.core_type = #tpu.core_type<tc>, window_params = [{transform_indices = @transform_0, window_bounds = array<i64: 128, 784>}, {pipeline_mode = #tpu.pipeline_mode<synchronous>, transform_indices = @transform_1, window_bounds = array<i64: 784, 512>}, {pipeline_mode = #tpu.pipeline_mode<synchronous>, transform_indices = @transform_2, window_bounds = array<i64: 1, 512>}, {pipeline_mode = #tpu.pipeline_mode<synchronous>, transform_indices = @transform_3, window_bounds = array<i64: 512, 256>}, {pipeline_mode = #tpu.pipeline_mode<synchronous>, transform_indices = @transform_4, window_bounds = array<i64: 1, 256>}, {pipeline_mode = #tpu.pipeline_mode<synchronous>, transform_indices = @transform_5, window_bounds = array<i64: 256, 128>}, {pipeline_mode = #tpu.pipeline_mode<synchronous>, transform_indices = @transform_6, window_bounds = array<i64: 1, 128>}, {pipeline_mode = #tpu.pipeline_mode<synchronous>, transform_indices = @transform_7, window_bounds = array<i64: 128, 128>}, {pipeline_mode = #tpu.pipeline_mode<synchronous>, transform_indices = @transform_8, window_bounds = array<i64: 1, 128>}, {transform_indices = @transform_9, window_bounds = array<i64: 128, 128>}]} {
    %c0 = arith.constant 0 : index
    %c0_0 = arith.constant 0 : index
    %0 = vector.load %arg1[%c0, %c0_0] : memref<128x784xf32, #tpu.memory_space<vmem>>, vector<128x784xf32>
    %1 = arith.truncf %0 : vector<128x784xf32> to vector<128x784xbf16>
    %c0_1 = arith.constant 0 : index
    %c0_2 = arith.constant 0 : index
    %2 = vector.load %arg2[%c0_1, %c0_2] : memref<784x512xbf16, #tpu.memory_space<vmem>>, vector<784x512xbf16>
    %cst = arith.constant dense<0.000000e+00> : vector<128x512xf32>
    %3 = tpu.matmul %1, %2, %cst {dimension_numbers = #tpu.dot_dimension_numbers<[1], [0], [0], [1], [0, 0, 1, 1], [], []>} : vector<128x784xbf16>, vector<784x512xbf16>, vector<128x512xf32> -> vector<128x512xf32>
    %c0_3 = arith.constant 0 : index
    %c0_4 = arith.constant 0 : index
    %4 = vector.load %arg3[%c0_3, %c0_4] : memref<1x512xf32, #tpu.memory_space<vmem>>, vector<1x512xf32>
    %5 = vector.broadcast %4 : vector<1x512xf32> to vector<128x512xf32>
    %6 = arith.addf %3, %5 : vector<128x512xf32>
    %cst_5 = arith.constant 0.000000e+00 : f32
    %7 = vector.broadcast %cst_5 : f32 to vector<128x512xf32>
    %8 = arith.maximumf %6, %7 : vector<128x512xf32>
    %9 = arith.truncf %8 : vector<128x512xf32> to vector<128x512xbf16>
    %c0_6 = arith.constant 0 : index
    %c0_7 = arith.constant 0 : index
    %10 = vector.load %arg4[%c0_6, %c0_7] : memref<512x256xbf16, #tpu.memory_space<vmem>>, vector<512x256xbf16>
    %cst_8 = arith.constant dense<0.000000e+00> : vector<128x256xf32>
    %11 = tpu.matmul %9, %10, %cst_8 {dimension_numbers = #tpu.dot_dimension_numbers<[1], [0], [0], [1], [0, 0, 1, 1], [], []>} : vector<128x512xbf16>, vector<512x256xbf16>, vector<128x256xf32> -> vector<128x256xf32>
    %c0_9 = arith.constant 0 : index
    %c0_10 = arith.constant 0 : index
    %12 = vector.load %arg5[%c0_9, %c0_10] : memref<1x256xf32, #tpu.memory_space<vmem>>, vector<1x256xf32>
    %13 = vector.broadcast %12 : vector<1x256xf32> to vector<128x256xf32>
    %14 = arith.addf %11, %13 : vector<128x256xf32>
    %cst_11 = arith.constant 0.000000e+00 : f32
    %15 = vector.broadcast %cst_11 : f32 to vector<128x256xf32>
    %16 = arith.maximumf %14, %15 : vector<128x256xf32>
    %17 = arith.truncf %16 : vector<128x256xf32> to vector<128x256xbf16>
    %c0_12 = arith.constant 0 : index
    %c0_13 = arith.constant 0 : index
    %18 = vector.load %arg6[%c0_12, %c0_13] : memref<256x128xbf16, #tpu.memory_space<vmem>>, vector<256x128xbf16>
    %cst_14 = arith.constant dense<0.000000e+00> : vector<128x128xf32>
    %19 = tpu.matmul %17, %18, %cst_14 {dimension_numbers = #tpu.dot_dimension_numbers<[1], [0], [0], [1], [0, 0, 1, 1], [], []>} : vector<128x256xbf16>, vector<256x128xbf16>, vector<128x128xf32> -> vector<128x128xf32>
    %c0_15 = arith.constant 0 : index
    %c0_16 = arith.constant 0 : index
    %20 = vector.load %arg7[%c0_15, %c0_16] : memref<1x128xf32, #tpu.memory_space<vmem>>, vector<1x128xf32>
    %21 = vector.broadcast %20 : vector<1x128xf32> to vector<128x128xf32>
    %22 = arith.addf %19, %21 : vector<128x128xf32>
    %cst_17 = arith.constant 0.000000e+00 : f32
    %23 = vector.broadcast %cst_17 : f32 to vector<128x128xf32>
    %24 = arith.maximumf %22, %23 : vector<128x128xf32>
    %25 = arith.truncf %24 : vector<128x128xf32> to vector<128x128xbf16>
    %c0_18 = arith.constant 0 : index
    %c0_19 = arith.constant 0 : index
    %26 = vector.load %arg8[%c0_18, %c0_19] : memref<128x128xbf16, #tpu.memory_space<vmem>>, vector<128x128xbf16>
    %cst_20 = arith.constant dense<0.000000e+00> : vector<128x128xf32>
    %27 = tpu.matmul %25, %26, %cst_20 {dimension_numbers = #tpu.dot_dimension_numbers<[1], [0], [0], [1], [0, 0, 1, 1], [], []>} : vector<128x128xbf16>, vector<128x128xbf16>, vector<128x128xf32> -> vector<128x128xf32>
    %c0_21 = arith.constant 0 : index
    %c0_22 = arith.constant 0 : index
    %28 = vector.load %arg9[%c0_21, %c0_22] : memref<1x128xf32, #tpu.memory_space<vmem>>, vector<1x128xf32>
    %29 = vector.broadcast %28 : vector<1x128xf32> to vector<128x128xf32>
    %30 = arith.addf %27, %29 : vector<128x128xf32>
    %c0_23 = arith.constant 0 : index
    %c0_24 = arith.constant 0 : index
    %31 = vector.load %arg10[%c0_23, %c0_24] : memref<128x128xf32, #tpu.memory_space<vmem>>, vector<128x128xf32>
    tpu.vector_store %arg10[%c0_23, %c0_24], %30 {strides = array<i32>} : memref<128x128xf32, #tpu.memory_space<vmem>>, vector<128x128xf32>,
    return
  }
  func.func @transform_0(%arg0: i32) -> (i32, i32) {
    %c0_i32 = arith.constant 0 : i32
    %c0_i32_0 = arith.constant 0 : i32
    return %arg0, %c0_i32 : i32, i32
  }
  func.func @transform_1(%arg0: i32) -> (i32, i32) {
    %c0_i32 = arith.constant 0 : i32
    %c0_i32_0 = arith.constant 0 : i32
    %c0_i32_1 = arith.constant 0 : i32
    return %c0_i32, %c0_i32_0 : i32, i32
  }
  func.func @transform_2(%arg0: i32) -> (i32, i32) {
    %c0_i32 = arith.constant 0 : i32
    %c0_i32_0 = arith.constant 0 : i32
    %c0_i32_1 = arith.constant 0 : i32
    return %c0_i32, %c0_i32_0 : i32, i32
  }
  func.func @transform_3(%arg0: i32) -> (i32, i32) {
    %c0_i32 = arith.constant 0 : i32
    %c0_i32_0 = arith.constant 0 : i32
    %c0_i32_1 = arith.constant 0 : i32
    return %c0_i32, %c0_i32_0 : i32, i32
  }
  func.func @transform_4(%arg0: i32) -> (i32, i32) {
    %c0_i32 = arith.constant 0 : i32
    %c0_i32_0 = arith.constant 0 : i32
    %c0_i32_1 = arith.constant 0 : i32
    return %c0_i32, %c0_i32_0 : i32, i32
  }
  func.func @transform_5(%arg0: i32) -> (i32, i32) {
    %c0_i32 = arith.constant 0 : i32
    %c0_i32_0 = arith.constant 0 : i32
    %c0_i32_1 = arith.constant 0 : i32
    return %c0_i32, %c0_i32_0 : i32, i32
  }
  func.func @transform_6(%arg0: i32) -> (i32, i32) {
    %c0_i32 = arith.constant 0 : i32
    %c0_i32_0 = arith.constant 0 : i32
    %c0_i32_1 = arith.constant 0 : i32
    return %c0_i32, %c0_i32_0 : i32, i32
  }
  func.func @transform_7(%arg0: i32) -> (i32, i32) {
    %c0_i32 = arith.constant 0 : i32
    %c0_i32_0 = arith.constant 0 : i32
    %c0_i32_1 = arith.constant 0 : i32
    return %c0_i32, %c0_i32_0 : i32, i32
  }
  func.func @transform_8(%arg0: i32) -> (i32, i32) {
    %c0_i32 = arith.constant 0 : i32
    %c0_i32_0 = arith.constant 0 : i32
    %c0_i32_1 = arith.constant 0 : i32
    return %c0_i32, %c0_i32_0 : i32, i32
  }
  func.func @transform_9(%arg0: i32) -> (i32, i32) {
    %c0_i32 = arith.constant 0 : i32
    %c0_i32_0 = arith.constant 0 : i32
    return %arg0, %c0_i32 : i32, i32
  }
}

</mosaic_0001>

<bundles_post_ra>
// kernel: _mlp_forward_impl.1
= control target key start
LH: loop header
LB: loop body
LE: loop exit
PB: predicated region body
PF: predicated region fallthrough
CT: control target
= control target key end

     0   :  { %s5141_s30 = smov 0   ;;  %s6512_s0 = inlined_call_operand.vmem [shape: f32[256,784], index: 0, kind: input, shape index: {}]   ;;  %s6513_s1 = inlined_call_operand.vmem [shape: bf16[784,512], index: 1, kind: input, shape index: {}]   ;;  %s6514_s2 = inlined_call_operand.vmem [shape: f32[1,512], index: 2, kind: input, shape index: {}]   ;;  %s6515_s3 = inlined_call_operand.vmem [shape: bf16[512,256], index: 3, kind: input, shape index: {}]   ;;  %s6516_s4 = inlined_call_operand.vmem [shape: f32[1,256], index: 4, kind: input, shape index: {}]   ;;  %s6517_s5 = inlined_call_operand.vmem [shape: bf16[256,128], index: 5, kind: input, shape index: {}]   ;;  %s6518_s6 = inlined_call_operand.vmem [shape: f32[1,128], index: 6, kind: input, shape index: {}]   ;;  %s6519_s7 = inlined_call_operand.vmem [shape: bf16[128,128], index: 7, kind: input, shape index: {}]   ;;  %s6520_s8 = inlined_call_operand.vmem [shape: f32[1,128], index: 8, kind: input, shape index: {}]   ;;  %s6521_s9 = inlined_call_operand.vmem [shape: f32[256,128], index: 9, kind: output, shape index: {}]  }
   0x1 LB: > { %s3897_s10 = sadd.s32 4294967295, %s5088_s30   ;;  %p3901_p0 = scmp.ge.s32.totalorder %s5088_s30, 1  ;;  %s5088_s30 = sphi %s5141_s30, %s19_s30  }
   0x2   : > { %p289_p1 = scmp.lt.s32.totalorder %s5088_s30, 3 }
   0x4   : > { %p290_p2 = pnand %p3901_p0, %p289_p1 }
   0x5   : > { %v4668_v0 = vld [vmem:[%s6513_s1 + $0x4] ss:$16 sps:$4 sm:$0xff] (!%p290_p2)   ;;  %s3902_s13 = sshll.u32 (!%p290_p2), %s3897_s10, 4  ;;  %v4670_v1 = vld [vmem:[%s6513_s1] ss:$16 sps:$4 sm:$0xff] (!%p290_p2)   ;;  %v5090_v2 = vmov (!%p290_p2), 0  }
   0x6   : > { %293 = sbr.rel (%p290_p2) target bundleno = 1217 (0x4c1), region = 56  ;;  %2102 = vmatprep.mubr.bf16.mxu1 (!%p290_p2), %v5090_v2  ;;  %p327_p3 = scmp.lt.s32.totalorder (!%p290_p2), %s3902_s13, 31  ;;  %1731 = vmatprep.subr.bf16.mxu0 (!%p290_p2), %v4668_v0  ;;  %v4671_v3 = vld [vmem:[%s6513_s1 + $0x604] ss:$16 sps:$4 sm:$0xff] (!%p290_p2)   ;;  %v4675_v5 = vld [vmem:[%s6513_s1 + $0x600] ss:$16 sps:$4 sm:$0xff] (!%p290_p2)  }
   0x7   : > { %1732 = vmatpush1.bf16.msra.mxu0 (!%p290_p2), %v4670_v1  ;;  %v4673_v4 = vld [vmem:[%s6513_s1 + $0x24] ss:$16 sps:$4 sm:$0xff] (!%p290_p2)   ;;  %v4676_v6 = vld [vmem:[%s6513_s1 + $0x20] ss:$16 sps:$4 sm:$0xff] (!%p290_p2)   ;;  %2070 = vmatprep.subr.bf16.mxu1 (!%p290_p2), %v4671_v3  ;;  %v4679_v7 = vld [vmem:[%s6513_s1 + $0xc] ss:$16 sps:$4 sm:$0xff] (!%p290_p2)  }
   0x8   : > { %1733 = vmatprep.subr.bf16.mxu0 (!%p290_p2), %v4673_v4  ;;  %2071 = vmatpush1.bf16.msra.mxu1 (!%p290_p2), %v4675_v5  ;;  %v4680_v8 = vld [vmem:[%s6513_s1 + $0x44] ss:$16 sps:$4 sm:$0xff] (!%p290_p2)   ;;  %v4682_v9 = vld [vmem:[%s6513_s1 + $0x40] ss:$16 sps:$4 sm:$0xff] (!%p290_p2)   ;;  %v4677_v11 = vld [vmem:[%s6513_s1 + $0x8] ss:$16 sps:$4 sm:$0xff] (!%p290_p2)  }
   0x9   : > { %2183 = vmatprep.subr.bf16.mxu1 (!%p290_p2), %v4679_v7  ;;  %v4686_v10 = vld [vmem:[%s6513_s1 + $0x64] ss:$16 sps:$4 sm:$0xff] (!%p290_p2)   ;;  %vm1706_vm0 = vcmask (!%p290_p2), 130048   ;;  %v4685_v15 = vld [vmem:[%s6513_s1 + $0x2c] ss:$16 sps:$4 sm:$0xff] (!%p290_p2)  }
   0xa   : > { %v4688_v16 = vld [vmem:[%s6513_s1 + $0x60] ss:$16 sps:$4 sm:$0xff] (!%p290_p2)   ;;  %v4683_v17 = vld [vmem:[%s6513_s1 + $0x28] ss:$16 sps:$4 sm:$0xff] (!%p290_p2)   ;;  %v4692_v18 = vld [vmem:[%s6513_s1 + $0x84] ss:$16 sps:$4 sm:$0xff] (!%p290_p2)  }
   0xb   : > { %1734 = vmatpush1.bf16.msra.mxu0 (!%p290_p2), %v4676_v6  ;;  %v4691_v21 = vld [vmem:[%s6513_s1 + $0x4c] ss:$16 sps:$4 sm:$0xff] (!%p290_p2)   ;;  %v4694_v22 = vld [vmem:[%s6513_s1 + $0x80] ss:$16 sps:$4 sm:$0xff] (!%p290_p2)   ;;  %v4698_v24 = vld [vmem:[%s6513_s1 + $0xa4] ss:$16 sps:$4 sm:$0xff] (!%p290_p2)  }
   0xc   : > { %1735 = vmatprep.subr.bf16.mxu0 (!%p290_p2), %v4680_v8  ;;  %v4689_v25 = vld [vmem:[%s6513_s1 + $0x48] ss:$16 sps:$4 sm:$0xff] (!%p290_p2)   ;;  %v4697_v26 = vld [vmem:[%s6513_s1 + $0x6c] ss:$16 sps:$4 sm:$0xff] (!%p290_p2)   ;;  %v4700_v27 = vld [vmem:[%s6513_s1 + $0xa0] ss:$16 sps:$4 sm:$0xff] (!%p290_p2)  }
   0xd   : > { %s6523_s13 = smov (!%p327_p3, %s3902_s13), 31  ;;  %v4695_v28 = vld [vmem:[%s6513_s1 + $0x68] ss:$16 sps:$4 sm:$0xff]   ;;  %v4704_v29 = vld [vmem:[%s6513_s1 + $0xc4] ss:$16 sps:$4 sm:$0xff]  }
   0xe   : > { %s4658_s28 = smul.u32 56, %s6523_s13  ;;  %v4703_v32 = vld [vmem:[%s6513_s1 + $0x8c] ss:$16 sps:$4 sm:$0xff]   ;;  %v4706_v33 = vld [vmem:[%s6513_s1 + $0xc0] ss:$16 sps:$4 sm:$0xff]   ;;  %s3905_s24 = sshll.u32 %s6523_s13, 3 }
   0xf   : > { %1736 = vmatpush1.bf16.msra.mxu0 %v4682_v9  ;;  %v4710_v35 = vld [vmem:[%s6513_s1 + $0xe4] ss:$16 sps:$4 sm:$0xff]   ;;  %v4701_v36 = vld [vmem:[%s6513_s1 + $0x88] ss:$16 sps:$4 sm:$0xff]   ;;  %v4709_v37 = vld [vmem:[%s6513_s1 + $0xac] ss:$16 sps:$4 sm:$0xff]  }
  0x10   : > { %s5183_s14 = scalar_lea.vmem %s6512_s0, %s4658_s28  ;;  %1737 = vmatprep.subr.bf16.mxu0 %v4686_v10  ;;  %v4707_v38 = vld [vmem:[%s6513_s1 + $0xa8] ss:$16 sps:$4 sm:$0xff]   ;;  %v4712_v39 = vld [vmem:[%s6513_s1 + $0xe0] ss:$16 sps:$4 sm:$0xff]   ;;  %v4716_v40 = vld [vmem:[%s6513_s1 + $0x104] ss:$16 sps:$4 sm:$0xff]   ;;  %s6491_s28 = scalar_lea.vmem %s6521_s9, %s3905_s24 }
  0x11   : > { %v346_v12 = vld [vmem:[%s5183_s14 + $0x30] sm:$0xff]  ;;  %v353_v13 = vld [vmem:[%s5183_s14 + $0x68] sm:$0xff]  ;;  %v360_v19 = vld [vmem:[%s5183_s14 + $0xa0] sm:$0xff] }
  0x12   : > { %v5193_v14 = vpack.c.bf16 %v353_v13, %v346_v12  ;;  %v367_v20 = vld [vmem:[%s5183_s14 + $0xd8] sm:$0xff]  ;;  %v374_v30 = vld [vmem:[%s5183_s14 + $0x110] sm:$0xff]  ;;  %v381_v31 = vld [vmem:[%s5183_s14 + $0x148] sm:$0xff] }
  0x13   : > { %1738 = vmatpush1.bf16.msra.mxu0 %v4688_v16  ;;  %v5218_v23 = vpack.c.bf16 %v367_v20, %v360_v19  ;;  %v5249_v34 = vpack.c.bf16 %v381_v31, %v374_v30  ;;  %v388_v41 = vld [vmem:[%s5183_s14 + $0x180] sm:$0xff]  ;;  %v395_v42 = vld [vmem:[%s5183_s14 + $0x1b8] sm:$0xff]  ;;  %v402_v52 = vld [vmem:[%s5183_s14 + $0x1f0] sm:$0xff] }
  0x14   : > { %4102 = vmatmul.mubr.msk.bf16.vlgmr.msra.gmra.mrb[0].mxu1 %vm1706_vm0, %v5193_v14  ;;  %1739 = vmatprep.subr.bf16.mxu0 %v4692_v18  ;;  %v4715_v43 = vld [vmem:[%s6513_s1 + $0xcc] ss:$16 sps:$4 sm:$0xff]   ;;  %v4718_v44 = vld [vmem:[%s6513_s1 + $0x100] ss:$16 sps:$4 sm:$0xff]   ;;  %v5280_v45 = vpack.c.bf16 %v395_v42, %v388_v41  ;;  %v4722_v46 = vld [vmem:[%s6513_s1 + $0x124] ss:$16 sps:$4 sm:$0xff]  }
  0x15   : > { %2184 = vmatpush1.bf16.msra.mxu1 %v4677_v11  ;;  %2112 = vmatprep.mubr.bf16.mxu1 %v5090_v2  ;;  %v4713_v47 = vld [vmem:[%s6513_s1 + $0xc8] ss:$16 sps:$4 sm:$0xff]   ;;  %v4721_v48 = vld [vmem:[%s6513_s1 + $0xec] ss:$16 sps:$4 sm:$0xff]   ;;  %v4724_v49 = vld [vmem:[%s6513_s1 + $0x120] ss:$16 sps:$4 sm:$0xff]  }
  0x16   : > { %2185 = vmatprep.subr.bf16.mxu1 %v4685_v15  ;;  %v4719_v50 = vld [vmem:[%s6513_s1 + $0xe8] ss:$16 sps:$4 sm:$0xff]   ;;  %v4728_v51 = vld [vmem:[%s6513_s1 + $0x144] ss:$16 sps:$4 sm:$0xff]   ;;  %v4727_v54 = vld [vmem:[%s6513_s1 + $0x10c] ss:$16 sps:$4 sm:$0xff]  }
  0x17   : > { %1740 = vmatpush1.bf16.msra.mxu0 %v4694_v22  ;;  %v409_v53 = vld [vmem:[%s5183_s14 + $0x228] sm:$0xff]  ;;  %v4730_v55 = vld [vmem:[%s6513_s1 + $0x140] ss:$16 sps:$4 sm:$0xff]   ;;  %v4734_v57 = vld [vmem:[%s6513_s1 + $0x164] ss:$16 sps:$4 sm:$0xff]  }
  0x18   : > { %1741 = vmatprep.subr.bf16.mxu0 %v4698_v24  ;;  %v5311_v56 = vpack.c.bf16 %v409_v53, %v402_v52  ;;  %v4725_v58 = vld [vmem:[%s6513_s1 + $0x108] ss:$16 sps:$4 sm:$0xff]   ;;  %v4733_v59 = vld [vmem:[%s6513_s1 + $0x12c] ss:$16 sps:$4 sm:$0xff]   ;;  %v4736_v61 = vld [vmem:[%s6513_s1 + $0x160] ss:$16 sps:$4 sm:$0xff]  }
  0x19   : > { %2186 = vmatpush1.bf16.msra.mxu1 %v4683_v17  ;;  %v4731_v60 = vld [vmem:[%s6513_s1 + $0x128] ss:$16 sps:$4 sm:$0xff]   ;;  %v4739_v62 = vld [vmem:[%s6513_s1 + $0x14c] ss:$16 sps:$4 sm:$0xff]   ;;  %v4740_v63 = vld [vmem:[%s6513_s1 + $0x184] ss:$16 sps:$4 sm:$0xff]  }
  0x1a   : > { %2187 = vmatprep.subr.bf16.mxu1 %v4691_v21  ;;  %v416_v0 = vld [vmem:[%s5183_s14 + $0x260] sm:$0xff]  ;;  %v423_v1 = vld [vmem:[%s5183_s14 + $0x298] sm:$0xff]  ;;  %v341_v3 = vld [vmem:[%s5183_s14 + $0x8] sm:$0xff] }
  0x1b   : > { %1742 = vmatpush1.bf16.msra.mxu0 %v4700_v27  ;;  %v348_v4 = vld [vmem:[%s5183_s14 + $0x40] sm:$0xff]  ;;  %v5346_v7 = vpack.c.bf16 %v423_v1, %v416_v0  ;;  %v4737_v9 = vld [vmem:[%s6513_s1 + $0x148] ss:$16 sps:$4 sm:$0xff]   ;;  %v4745_v10 = vld [vmem:[%s6513_s1 + $0x16c] ss:$16 sps:$4 sm:$0xff]  }
  0x1c   : > { %4103 = vmatmul.mubr.msk.bf16.gmra.mrb[4].mxu1 %vm1706_vm0, %v5218_v23  ;;  %1743 = vmatprep.subr.bf16.mxu0 %v4704_v29  ;;  %v4742_v5 = vld [vmem:[%s6513_s1 + $0x180] ss:$16 sps:$4 sm:$0xff]   ;;  %v5344_v6 = vpack.c.bf16 %v348_v4, %v341_v3  ;;  %v4746_v8 = vld [vmem:[%s6513_s1 + $0x1a4] ss:$16 sps:$4 sm:$0xff]   ;;  %v4743_v13 = vld [vmem:[%s6513_s1 + $0x168] ss:$16 sps:$4 sm:$0xff]  }
  0x1d   : > { %2188 = vmatpush1.bf16.msra.mxu1 %v4689_v25  ;;  %2122 = vmatprep.mubr.bf16.mxu1 %v5090_v2  ;;  %v4748_v11 = vld [vmem:[%s6513_s1 + $0x1a0] ss:$16 sps:$4 sm:$0xff]   ;;  %v4752_v12 = vld [vmem:[%s6513_s1 + $0x1c4] ss:$16 sps:$4 sm:$0xff]   ;;  %v437_v16 = vld [vmem:[%s5183_s14 + $0x308] sm:$0xff] }
  0x1e   : > { %2189 = vmatprep.subr.bf16.mxu1 %v4697_v26  ;;  %1763 = vmatprep.mubr.bf16.mxu0 %v5344_v6  ;;  %v430_v15 = vld [vmem:[%s5183_s14 + $0x2d0] sm:$0xff]  ;;  %v4751_v17 = vld [vmem:[%s6513_s1 + $0x18c] ss:$16 sps:$4 sm:$0xff]   ;;  %v4749_v18 = vld [vmem:[%s6513_s1 + $0x188] ss:$16 sps:$4 sm:$0xff]  }
  0x1f   : > { %1744 = vmatpush1.bf16.msra.mxu0 %v4706_v33  ;;  %v4754_v19 = vld [vmem:[%s6513_s1 + $0x1c0] ss:$16 sps:$4 sm:$0xff]   ;;  %v5381_v20 = vpack.c.bf16 %v437_v16, %v430_v15  ;;  %v4758_v21 = vld [vmem:[%s6513_s1 + $0x1e4] ss:$16 sps:$4 sm:$0xff]   ;;  %v4757_v22 = vld [vmem:[%s6513_s1 + $0x1ac] ss:$16 sps:$4 sm:$0xff]  }
  0x20   : > { %1745 = vmatprep.subr.bf16.mxu0 %v4710_v35  ;;  %v4760_v24 = vld [vmem:[%s6513_s1 + $0x1e0] ss:$16 sps:$4 sm:$0xff]   ;;  %v4755_v26 = vld [vmem:[%s6513_s1 + $0x1a8] ss:$16 sps:$4 sm:$0xff]   ;;  %v4763_v33 = vld [vmem:[%s6513_s1 + $0x1cc] ss:$16 sps:$4 sm:$0xff]  }
  0x21   : > { %2190 = vmatpush1.bf16.msra.mxu1 %v4695_v28  ;;  %v340_v25 = vld [vmem:[%s5183_s14] sm:$0xff]  ;;  %v347_v27 = vld [vmem:[%s5183_s14 + $0x38] sm:$0xff]  ;;  %v362_v30 = vld [vmem:[%s5183_s14 + $0xb0] sm:$0xff] }
  0x22   : > { %2191 = vmatprep.subr.bf16.mxu1 %v4703_v32  ;;  %v4766_v28 = vld [vmem:[%s6513_s1 + $0x204] ss:$16 sps:$4 sm:$0xff]   ;;  %v355_v29 = vld [vmem:[%s5183_s14 + $0x78] sm:$0xff]  ;;  %v452_v35 = vpack.c.bf16 %v347_v27, %v340_v25  ;;  %v4770_v42 = vld [vmem:[%s6513_s1 + $0x220] ss:$16 sps:$4 sm:$0xff]  }
  0x23   : > { %1746 = vmatpush1.bf16.msra.mxu0 %v4712_v39  ;;  %v444_v31 = vld [vmem:[%s5183_s14 + $0x340] sm:$0xff]  ;;  %v451_v32 = vld [vmem:[%s5183_s14 + $0x378] sm:$0xff]  ;;  %v397_v15 = vld [vmem:[%s5183_s14 + $0x1c8] sm:$0xff] }
  0x24   : > { %4104 = vmatmul.mubr.msk.bf16.gmra.mrb[8].mxu1 %vm1706_vm0, %v5249_v34  ;;  %1747 = vmatprep.subr.bf16.mxu0 %v4716_v40  ;;  %v4772_v39 = vld [vmem:[%s6513_s1 + $0x224] ss:$16 sps:$4 sm:$0xff]   ;;  %v4761_v40 = vld [vmem:[%s6513_s1 + $0x1c8] ss:$16 sps:$4 sm:$0xff]   ;;  %v4769_v41 = vld [vmem:[%s6513_s1 + $0x1ec] ss:$16 sps:$4 sm:$0xff]  }
  0x25   : > { %2192 = vmatpush1.bf16.msra.mxu1 %v4701_v36  ;;  %2132 = vmatprep.mubr.bf16.mxu1 %v5090_v2  ;;  %v4764_v36 = vld [vmem:[%s6513_s1 + $0x200] ss:$16 sps:$4 sm:$0xff]   ;;  %v4779_v0 = vld [vmem:[%s6513_s1 + $0x228] ss:$16 sps:$4 sm:$0xff]   ;;  %v4787_v1 = vld [vmem:[%s6513_s1 + $0x24c] ss:$16 sps:$4 sm:$0xff]  }
  0x26   : > { %2193 = vmatprep.subr.bf16.mxu1 %v4709_v37  ;;  %v460_v37 = vpack.c.bf16 %v362_v30, %v355_v29  ;;  %v4776_v52 = vld [vmem:[%s6513_s1 + $0x240] ss:$16 sps:$4 sm:$0xff]   ;;  %v4805_v25 = vld [vmem:[%s6513_s1 + $0x2ac] ss:$16 sps:$4 sm:$0xff]   ;;  %v4814_v30 = vld [vmem:[%s6513_s1 + $0x304] ss:$16 sps:$4 sm:$0xff]  }
  0x27   : > { %1748 = vmatpush1.bf16.msra.mxu0 %v4718_v44  ;;  %v361_v44 = vld [vmem:[%s5183_s14 + $0xa8] sm:$0xff]  ;;  %v4788_v4 = vld [vmem:[%s6513_s1 + $0x280] ss:$16 sps:$4 sm:$0xff]   ;;  %v403_v29 = vld [vmem:[%s5183_s14 + $0x1f8] sm:$0xff] }
  0x28   : > { %1749 = vmatprep.subr.bf16.mxu0 %v4722_v46  ;;  %v4778_v46 = vld [vmem:[%s6513_s1 + $0x244] ss:$16 sps:$4 sm:$0xff]   ;;  %v4806_v27 = vld [vmem:[%s6513_s1 + $0x2e0] ss:$16 sps:$4 sm:$0xff]  }
  0x29   : > { %2194 = vmatpush1.bf16.msra.mxu1 %v4707_v38  ;;  %v5413_v38 = vpack.c.bf16 %v451_v32, %v444_v31  ;;  %v404_v16 = vld [vmem:[%s5183_s14 + $0x200] sm:$0xff]  ;;  %v411_v31 = vld [vmem:[%s5183_s14 + $0x238] sm:$0xff]  ;;  %v418_v32 = vld [vmem:[%s5183_s14 + $0x270] sm:$0xff] }
  0x2a   : > { %2195 = vmatprep.subr.bf16.mxu1 %v4715_v43  ;;  %v354_v43 = vld [vmem:[%s5183_s14 + $0x70] sm:$0xff] }
  0x2b   : > { %1750 = vmatpush1.bf16.msra.mxu0 %v4724_v49  ;;  %v4767_v49 = vld [vmem:[%s6513_s1 + $0x1e8] ss:$16 sps:$4 sm:$0xff]  }
  0x2c   : > { %4105 = vmatmul.mubr.msk.bf16.gmra.mrb[12].mxu1 %vm1706_vm0, %v5280_v45  ;;  %1751 = vmatprep.subr.bf16.mxu0 %v4728_v51  ;;  %v459_v51 = vpack.c.bf16 %v361_v44, %v354_v43  ;;  %v4818_v43 = vld [vmem:[%s6513_s1 + $0x320] ss:$16 sps:$4 sm:$0xff]  }
  0x2d   : > { %2196 = vmatpush1.bf16.msra.mxu1 %v4713_v47  ;;  %2142 = vmatprep.mubr.bf16.mxu1 %v5090_v2  ;;  %v369_v47 = vld [vmem:[%s5183_s14 + $0xe8] sm:$0xff]  ;;  %v410_v44 = vld [vmem:[%s5183_s14 + $0x230] sm:$0xff] }
  0x2e   : > { %2197 = vmatprep.subr.bf16.mxu1 %v4721_v48  ;;  %v376_v48 = vld [vmem:[%s5183_s14 + $0x120] sm:$0xff] }
  0x2f   : > { %1752 = vmatpush1.bf16.msra.mxu0 %v4730_v55  ;;  %v467_v53 = vpack.c.bf16 %v376_v48, %v369_v47  ;;  %v4773_v55 = vld [vmem:[%s6513_s1 + $0x208] ss:$16 sps:$4 sm:$0xff]   ;;  %v4826_v47 = vld [vmem:[%s6513_s1 + $0x344] ss:$16 sps:$4 sm:$0xff]  }
  0x30   : > { %1753 = vmatprep.subr.bf16.mxu0 %v4734_v57  ;;  %v4781_v57 = vld [vmem:[%s6513_s1 + $0x22c] ss:$16 sps:$4 sm:$0xff]  }
  0x31   : > { %2198 = vmatpush1.bf16.msra.mxu1 %v4719_v50  ;;  %v4775_v50 = vld [vmem:[%s6513_s1 + $0x20c] ss:$16 sps:$4 sm:$0xff]  }
  0x32   : > { %2199 = vmatprep.subr.bf16.mxu1 %v4727_v54  ;;  %v4784_v54 = vld [vmem:[%s6513_s1 + $0x264] ss:$16 sps:$4 sm:$0xff]   ;;  %v425_v48 = vld [vmem:[%s5183_s14 + $0x2a8] sm:$0xff] }
  0x33   : > { %1754 = vmatpush1.bf16.msra.mxu0 %v4736_v61  ;;  %v4790_v61 = vld [vmem:[%s6513_s1 + $0x284] ss:$16 sps:$4 sm:$0xff]  }
  0x34   : > { %4106 = vmatmul.mubr.msk.bf16.gmra.mrb[16].mxu1 %vm1706_vm0, %v5311_v56  ;;  %1755 = vmatprep.subr.bf16.mxu0 %v4740_v63  ;;  %v390_v63 = vld [vmem:[%s5183_s14 + $0x190] sm:$0xff] }
  0x35   : > { %2200 = vmatpush1.bf16.msra.mxu1 %v4725_v58  ;;  %2152 = vmatprep.mubr.bf16.mxu1 %v5090_v2  ;;  %v4782_v58 = vld [vmem:[%s6513_s1 + $0x260] ss:$16 sps:$4 sm:$0xff]  }
  0x36   : > { %2201 = vmatprep.subr.bf16.mxu1 %v4733_v59  ;;  %v368_v59 = vld [vmem:[%s5183_s14 + $0xe0] sm:$0xff] }
  0x37   : > { %1756 = vmatpush1.bf16.msra.mxu0 %v4742_v5 }
  0x38   : > { %1757 = vmatprep.subr.bf16.mxu0 %v4746_v8  ;;  %v4796_v8 = vld [vmem:[%s6513_s1 + $0x2a4] ss:$16 sps:$4 sm:$0xff]  }
  0x39   : > { %2202 = vmatpush1.bf16.msra.mxu1 %v4731_v60  ;;  %v375_v60 = vld [vmem:[%s5183_s14 + $0x118] sm:$0xff] }
  0x3a   : > { %2203 = vmatprep.subr.bf16.mxu1 %v4739_v62  ;;  %v383_v62 = vld [vmem:[%s5183_s14 + $0x158] sm:$0xff]  ;;  %v466_v3 = vpack.c.bf16 %v375_v60, %v368_v59  ;;  %v4830_v59 = vld [vmem:[%s6513_s1 + $0x360] ss:$16 sps:$4 sm:$0xff]  }
  0x3b   : > { %1758 = vmatpush1.bf16.msra.mxu0 %v4748_v11  ;;  %v474_v5 = vpack.c.bf16 %v390_v63, %v383_v62  ;;  %v382_v11 = vld [vmem:[%s5183_s14 + $0x150] sm:$0xff]  ;;  %v424_v60 = vld [vmem:[%s5183_s14 + $0x2a0] sm:$0xff]  ;;  %v439_v63 = vld [vmem:[%s5183_s14 + $0x318] sm:$0xff] }
  0x3c   : > { %4107 = vmatmul.mubr.msk.bf16.gmra.mrb[20].mxu1 %vm1706_vm0, %v5346_v7  ;;  %1759 = vmatprep.subr.bf16.mxu0 %v4752_v12  ;;  %v389_v12 = vld [vmem:[%s5183_s14 + $0x188] sm:$0xff]  ;;  %v4838_v62 = vld [vmem:[%s6513_s1 + $0x384] ss:$16 sps:$4 sm:$0xff]  }
  0x3d   : > { %2204 = vmatpush1.bf16.msra.mxu1 %v4737_v9  ;;  %2162 = vmatprep.mubr.bf16.mxu1 %v5090_v2  ;;  %v4793_v9 = vld [vmem:[%s6513_s1 + $0x26c] ss:$16 sps:$4 sm:$0xff]  }
  0x3e   : > { %2205 = vmatprep.subr.bf16.mxu1 %v4745_v10  ;;  %v4794_v10 = vld [vmem:[%s6513_s1 + $0x2a0] ss:$16 sps:$4 sm:$0xff]  }
  0x3f   : > { %1760 = vmatpush1.bf16.msra.mxu0 %v4754_v19  ;;  %v473_v19 = vpack.c.bf16 %v389_v12, %v382_v11  ;;  %v4842_v11 = vld [vmem:[%s6513_s1 + $0x3a0] ss:$16 sps:$4 sm:$0xff]  }
  0x40   : > { %1761 = vmatprep.subr.bf16.mxu0 %v4758_v21  ;;  %v4800_v21 = vld [vmem:[%s6513_s1 + $0x2c0] ss:$16 sps:$4 sm:$0xff]  }
  0x41   : > { %2206 = vmatpush1.bf16.msra.mxu1 %v4743_v13  ;;  %v4802_v13 = vld [vmem:[%s6513_s1 + $0x2c4] ss:$16 sps:$4 sm:$0xff]  }
  0x42   : > { %2207 = vmatprep.subr.bf16.mxu1 %v4751_v17  ;;  %v4791_v17 = vld [vmem:[%s6513_s1 + $0x268] ss:$16 sps:$4 sm:$0xff]   ;;  %v438_v12 = vld [vmem:[%s5183_s14 + $0x310] sm:$0xff] }
  0x43   : > { %1762 = vmatpush1.bf16.msra.mxu0 %v4760_v24  ;;  %v4797_v24 = vld [vmem:[%s6513_s1 + $0x288] ss:$16 sps:$4 sm:$0xff]  }
  0x44   : > { %4108 = vmatmul.mubr.msk.bf16.gmra.mrb[24].mxu1 %vm1706_vm0, %v5381_v20  ;;  %1844 = vmatprep.subr.bf16.mxu0 %v4766_v28  ;;  %v396_v28 = vld [vmem:[%s5183_s14 + $0x1c0] sm:$0xff] }
  0x45   : > { %2208 = vmatpush1.bf16.msra.mxu1 %v4749_v18  ;;  %2172 = vmatprep.mubr.bf16.mxu1 %v5090_v2  ;;  %v4799_v18 = vld [vmem:[%s6513_s1 + $0x28c] ss:$16 sps:$4 sm:$0xff]  }
  0x46   : > { %2209 = vmatprep.subr.bf16.mxu1 %v4757_v22  ;;  %1764 = vmatmul.mubr.bf16.vlgmr.msra.gmra.mrb[0].mxu0 %v452_v35  ;;  %v481_v22 = vpack.c.bf16 %v404_v16, %v397_v15  ;;  %v4850_v15 = vld [vmem:[%s6513_s1 + $0x3c4] ss:$16 sps:$4 sm:$0xff]   ;;  %v343_v16 = vld [vmem:[%s5183_s14 + $0x18] sm:$0xff] }
  0x47   : > { %1845 = vmatpush1.bf16.msra.mxu0 %v4764_v36  ;;  %1773 = vmatprep.mubr.bf16.mxu0 %v460_v37  ;;  %v480_v36 = vpack.c.bf16 %v403_v29, %v396_v28  ;;  %v4854_v28 = vld [vmem:[%s6513_s1 + $0x3e0] ss:$16 sps:$4 sm:$0xff]  }
  0x48   : > { %1846 = vmatprep.subr.bf16.mxu0 %v4772_v39  ;;  %v4812_v39 = vld [vmem:[%s6513_s1 + $0x300] ss:$16 sps:$4 sm:$0xff]  }
  0x49   : > { %2210 = vmatpush1.bf16.msra.mxu1 %v4755_v26  ;;  %v4808_v26 = vld [vmem:[%s6513_s1 + $0x2e4] ss:$16 sps:$4 sm:$0xff]  }
  0x4a   : > { %2211 = vmatprep.subr.bf16.mxu1 %v4763_v33  ;;  %v4803_v33 = vld [vmem:[%s6513_s1 + $0x2a8] ss:$16 sps:$4 sm:$0xff]   ;;  %v342_v29 = vld [vmem:[%s5183_s14 + $0x10] sm:$0xff] }
  0x4b   : > { %1847 = vmatpush1.bf16.msra.mxu0 %v4770_v42  ;;  %v4817_v42 = vld [vmem:[%s6513_s1 + $0x2ec] ss:$16 sps:$4 sm:$0xff]  }
  0x4c   : > { %4109 = vmatmul.mubr.msk.bf16.gmra.mrb[28].mxu1 %vm1706_vm0, %v5413_v38  ;;  %1848 = vmatprep.subr.bf16.mxu0 %v4778_v46  ;;  %v417_v46 = vld [vmem:[%s5183_s14 + $0x268] sm:$0xff] }
  0x4d   : > { %2212 = vmatpush1.bf16.msra.mxu1 %v4761_v40  ;;  %2215 = vmatprep.mubr.bf16.mxu1 %v5344_v6  ;;  %v4785_v6 = vld [vmem:[%s6513_s1 + $0x248] ss:$16 sps:$4 sm:$0xff]   ;;  %v488_v40 = vpack.c.bf16 %v418_v32, %v411_v31  ;;  %v4862_v31 = vld [vmem:[%s6513_s1 + $0x404] ss:$16 sps:$4 sm:$0xff]  }
  0x4e   : > { %2213 = vmatprep.subr.bf16.mxu1 %v4769_v41  ;;  %1774 = vmatmul.mubr.bf16.gmra.mrb[4].mxu0 %v459_v51  ;;  %v4820_v41 = vld [vmem:[%s6513_s1 + $0x324] ss:$16 sps:$4 sm:$0xff]   ;;  %v357_v32 = vld [vmem:[%s5183_s14 + $0x88] sm:$0xff] }
  0x4f   : > { %1849 = vmatpush1.bf16.msra.mxu0 %v4776_v52  ;;  %1783 = vmatprep.mubr.bf16.mxu0 %v467_v53  ;;  %v487_v52 = vpack.c.bf16 %v417_v46, %v410_v44  ;;  %v4866_v44 = vld [vmem:[%s6513_s1 + $0x420] ss:$16 sps:$4 sm:$0xff]  }
  0x50   : > { %1850 = vmatprep.subr.bf16.mxu0 %v4784_v54  ;;  %v356_v46 = vld [vmem:[%s5183_s14 + $0x80] sm:$0xff] }
  0x51   : > { %2214 = vmatpush1.bf16.msra.mxu1 %v4767_v49  ;;  %v432_v49 = vld [vmem:[%s5183_s14 + $0x2e0] sm:$0xff] }
  0x52   : > { %2296 = vmatprep.subr.bf16.mxu1 %v4775_v50  ;;  %v4815_v50 = vld [vmem:[%s6513_s1 + $0x2e8] ss:$16 sps:$4 sm:$0xff]   ;;  %v495_v54 = vpack.c.bf16 %v432_v49, %v425_v48  ;;  %v4874_v48 = vld [vmem:[%s6513_s1 + $0x444] ss:$16 sps:$4 sm:$0xff]  }
  0x53   : > { %1851 = vmatpush1.bf16.msra.mxu0 %v4782_v58  ;;  %v4829_v58 = vld [vmem:[%s6513_s1 + $0x32c] ss:$16 sps:$4 sm:$0xff]  }
  0x54   : > { %2216 = vmatmul.mubr.bf16.vlgmr.msra.gmra.mrb[32].mxu1 %v452_v35  ;;  %1852 = vmatprep.subr.bf16.mxu0 %v4790_v61  ;;  %v4811_v35 = vld [vmem:[%s6513_s1 + $0x2cc] ss:$16 sps:$4 sm:$0xff]  }
  0x55   : > { %2297 = vmatpush1.bf16.msra.mxu1 %v4773_v55  ;;  %2225 = vmatprep.mubr.bf16.mxu1 %v460_v37  ;;  %v4809_v37 = vld [vmem:[%s6513_s1 + $0x2c8] ss:$16 sps:$4 sm:$0xff]   ;;  %v4832_v55 = vld [vmem:[%s6513_s1 + $0x364] ss:$16 sps:$4 sm:$0xff]  }
  0x56   : > { %2298 = vmatprep.subr.bf16.mxu1 %v4781_v57  ;;  %1784 = vmatmul.mubr.bf16.gmra.mrb[8].mxu0 %v466_v3  ;;  %v4821_v57 = vld [vmem:[%s6513_s1 + $0x308] ss:$16 sps:$4 sm:$0xff]  }
  0x57   : > { %1853 = vmatpush1.bf16.msra.mxu0 %v4788_v4  ;;  %1793 = vmatprep.mubr.bf16.mxu0 %v474_v5  ;;  %v431_v61 = vld [vmem:[%s5183_s14 + $0x2d8] sm:$0xff] }
  0x58   : > { %1854 = vmatprep.subr.bf16.mxu0 %v4796_v8  ;;  %v494_v4 = vpack.c.bf16 %v431_v61, %v424_v60  ;;  %v4844_v8 = vld [vmem:[%s6513_s1 + $0x3a4] ss:$16 sps:$4 sm:$0xff]   ;;  %v371_v49 = vld [vmem:[%s5183_s14 + $0xf8] sm:$0xff]  ;;  %v4878_v60 = vld [vmem:[%s6513_s1 + $0x460] ss:$16 sps:$4 sm:$0xff]  }
  0x59   : > { %2299 = vmatpush1.bf16.msra.mxu1 %v4779_v0  ;;  %v446_v0 = vld [vmem:[%s5183_s14 + $0x350] sm:$0xff] }
  0x5a   : > { %2300 = vmatprep.subr.bf16.mxu1 %v4787_v1  ;;  %v4827_v1 = vld [vmem:[%s6513_s1 + $0x328] ss:$16 sps:$4 sm:$0xff]   ;;  %v370_v61 = vld [vmem:[%s5183_s14 + $0xf0] sm:$0xff] }
  0x5b   : > { %1855 = vmatpush1.bf16.msra.mxu0 %v4794_v10  ;;  %v4841_v10 = vld [vmem:[%s6513_s1 + $0x36c] ss:$16 sps:$4 sm:$0xff]  }
  0x5c   : > { %2226 = vmatmul.mubr.bf16.gmra.mrb[36].mxu1 %v459_v51  ;;  %1856 = vmatprep.subr.bf16.mxu0 %v4802_v13  ;;  %v4823_v51 = vld [vmem:[%s6513_s1 + $0x30c] ss:$16 sps:$4 sm:$0xff]  }
  0x5d   : > { %2301 = vmatpush1.bf16.msra.mxu1 %v4785_v6  ;;  %2235 = vmatprep.mubr.bf16.mxu1 %v467_v53  ;;  %v4824_v53 = vld [vmem:[%s6513_s1 + $0x340] ss:$16 sps:$4 sm:$0xff]   ;;  %v502_v6 = vpack.c.bf16 %v446_v0, %v439_v63  ;;  %v445_v13 = vld [vmem:[%s5183_s14 + $0x348] sm:$0xff]  ;;  %v4886_v63 = vld [vmem:[%s6513_s1 + $0x484] ss:$16 sps:$4 sm:$0xff]  }
  0x5e   : > { %2302 = vmatprep.subr.bf16.mxu1 %v4793_v9  ;;  %1794 = vmatmul.mubr.bf16.gmra.mrb[12].mxu0 %v473_v19  ;;  %v4833_v9 = vld [vmem:[%s6513_s1 + $0x348] ss:$16 sps:$4 sm:$0xff]  }
  0x5f   : > { %1857 = vmatpush1.bf16.msra.mxu0 %v4800_v21  ;;  %1803 = vmatprep.mubr.bf16.mxu0 %v481_v22  ;;  %v501_v21 = vpack.c.bf16 %v445_v13, %v438_v12  ;;  %v385_v0 = vld [vmem:[%s5183_s14 + $0x168] sm:$0xff]  ;;  %v4890_v12 = vld [vmem:[%s6513_s1 + $0x4a0] ss:$16 sps:$4 sm:$0xff]  }
  0x60   : > { %1858 = vmatprep.subr.bf16.mxu0 %v4808_v26  ;;  %v4856_v26 = vld [vmem:[%s6513_s1 + $0x3e4] ss:$16 sps:$4 sm:$0xff]  }
  0x61   : > { %2303 = vmatpush1.bf16.msra.mxu1 %v4791_v17  ;;  %v350_v17 = vld [vmem:[%s5183_s14 + $0x50] sm:$0xff]  ;;  %v384_v13 = vld [vmem:[%s5183_s14 + $0x160] sm:$0xff] }
  0x62   : > { %2304 = vmatprep.subr.bf16.mxu1 %v4799_v18  ;;  %v4839_v18 = vld [vmem:[%s6513_s1 + $0x368] ss:$16 sps:$4 sm:$0xff]  }
  0x63   : > { %1859 = vmatpush1.bf16.msra.mxu0 %v4806_v27  ;;  %v4853_v27 = vld [vmem:[%s6513_s1 + $0x3ac] ss:$16 sps:$4 sm:$0xff]  }
  0x64   : > { %2236 = vmatmul.mubr.bf16.gmra.mrb[40].mxu1 %v466_v3  ;;  %1860 = vmatprep.subr.bf16.mxu0 %v4814_v30  ;;  %v4835_v3 = vld [vmem:[%s6513_s1 + $0x34c] ss:$16 sps:$4 sm:$0xff]  }
  0x65   : > { %2305 = vmatpush1.bf16.msra.mxu1 %v4797_v24  ;;  %2245 = vmatprep.mubr.bf16.mxu1 %v474_v5  ;;  %v4836_v5 = vld [vmem:[%s6513_s1 + $0x380] ss:$16 sps:$4 sm:$0xff]   ;;  %v455_v24 = vpack.c.bf16 %v350_v17, %v343_v16  ;;  %v349_v30 = vld [vmem:[%s5183_s14 + $0x48] sm:$0xff]  ;;  %v4898_v16 = vld [vmem:[%s6513_s1 + $0x4c4] ss:$16 sps:$4 sm:$0xff]  }
  0x66   : > { %2306 = vmatprep.subr.bf16.mxu1 %v4805_v25  ;;  %1804 = vmatmul.mubr.bf16.gmra.mrb[16].mxu0 %v480_v36  ;;  %v4845_v25 = vld [vmem:[%s6513_s1 + $0x388] ss:$16 sps:$4 sm:$0xff]  }
  0x67   : > { %1861 = vmatpush1.bf16.msra.mxu0 %v4812_v39  ;;  %1813 = vmatprep.mubr.bf16.mxu0 %v488_v40  ;;  %v4860_v39 = vld [vmem:[%s6513_s1 + $0x400] ss:$16 sps:$4 sm:$0xff]   ;;  %v399_v17 = vld [vmem:[%s5183_s14 + $0x1d8] sm:$0xff] }
  0x68   : > { %1862 = vmatprep.subr.bf16.mxu0 %v4820_v41  ;;  %v4857_v41 = vld [vmem:[%s6513_s1 + $0x3c8] ss:$16 sps:$4 sm:$0xff]  }
  0x69   : > { %2307 = vmatpush1.bf16.msra.mxu1 %v4803_v33  ;;  %v364_v33 = vld [vmem:[%s5183_s14 + $0xc0] sm:$0xff] }
  0x6a   : > { %2308 = vmatprep.subr.bf16.mxu1 %v4811_v35  ;;  %v4851_v35 = vld [vmem:[%s6513_s1 + $0x3a8] ss:$16 sps:$4 sm:$0xff]  }
  0x6b   : > { %1863 = vmatpush1.bf16.msra.mxu0 %v4818_v43  ;;  %v4868_v43 = vld [vmem:[%s6513_s1 + $0x424] ss:$16 sps:$4 sm:$0xff]  }
  0x6c   : > { %2246 = vmatmul.mubr.bf16.gmra.mrb[44].mxu1 %v473_v19  ;;  %1864 = vmatprep.subr.bf16.mxu0 %v4826_v47  ;;  %v4847_v19 = vld [vmem:[%s6513_s1 + $0x38c] ss:$16 sps:$4 sm:$0xff]  }
  0x6d   : > { %2309 = vmatpush1.bf16.msra.mxu1 %v4809_v37  ;;  %2255 = vmatprep.mubr.bf16.mxu1 %v481_v22  ;;  %v4848_v22 = vld [vmem:[%s6513_s1 + $0x3c0] ss:$16 sps:$4 sm:$0xff]   ;;  %v454_v37 = vpack.c.bf16 %v349_v30, %v342_v29  ;;  %v363_v47 = vld [vmem:[%s5183_s14 + $0xb8] sm:$0xff] }
  0x6e   : > { %2310 = vmatprep.subr.bf16.mxu1 %v4817_v42  ;;  %1814 = vmatmul.mubr.bf16.gmra.mrb[20].mxu0 %v487_v52  ;;  %v4865_v42 = vld [vmem:[%s6513_s1 + $0x3ec] ss:$16 sps:$4 sm:$0xff]   ;;  %v4902_v29 = vld [vmem:[%s6513_s1 + $0x4e0] ss:$16 sps:$4 sm:$0xff]  }
  0x6f   : > { %1865 = vmatpush1.bf16.msra.mxu0 %v4824_v53  ;;  %1823 = vmatprep.mubr.bf16.mxu0 %v495_v54  ;;  %v461_v53 = vpack.c.bf16 %v363_v47, %v356_v46  ;;  %v398_v30 = vld [vmem:[%s5183_s14 + $0x1d0] sm:$0xff]  ;;  %v412_v47 = vld [vmem:[%s5183_s14 + $0x240] sm:$0xff] }
  0x70   : > { %1866 = vmatprep.subr.bf16.mxu0 %v4832_v55  ;;  %v4872_v55 = vld [vmem:[%s6513_s1 + $0x440] ss:$16 sps:$4 sm:$0xff]  }
  0x71   : > { %2311 = vmatpush1.bf16.msra.mxu1 %v4815_v50  ;;  %v378_v50 = vld [vmem:[%s5183_s14 + $0x130] sm:$0xff] }
  0x72   : > { %2312 = vmatprep.subr.bf16.mxu1 %v4823_v51  ;;  %v4863_v51 = vld [vmem:[%s6513_s1 + $0x3e8] ss:$16 sps:$4 sm:$0xff]   ;;  %v4914_v46 = vld [vmem:[%s6513_s1 + $0x520] ss:$16 sps:$4 sm:$0xff]  }
  0x73   : > { %1867 = vmatpush1.bf16.msra.mxu0 %v4830_v59  ;;  %v4877_v59 = vld [vmem:[%s6513_s1 + $0x42c] ss:$16 sps:$4 sm:$0xff]  }
  0x74   : > { %2256 = vmatmul.mubr.bf16.gmra.mrb[48].mxu1 %v480_v36  ;;  %1868 = vmatprep.subr.bf16.mxu0 %v4838_v62  ;;  %v4859_v36 = vld [vmem:[%s6513_s1 + $0x3cc] ss:$16 sps:$4 sm:$0xff]  }
  0x75   : > { %2313 = vmatpush1.bf16.msra.mxu1 %v4821_v57  ;;  %2265 = vmatprep.mubr.bf16.mxu1 %v488_v40  ;;  %v462_v40 = vpack.c.bf16 %v364_v33, %v357_v32  ;;  %v469_v57 = vpack.c.bf16 %v378_v50, %v371_v49  ;;  %v377_v62 = vld [vmem:[%s5183_s14 + $0x128] sm:$0xff]  ;;  %v4910_v32 = vld [vmem:[%s6513_s1 + $0x504] ss:$16 sps:$4 sm:$0xff]   ;;  %v427_v50 = vld [vmem:[%s5183_s14 + $0x2b8] sm:$0xff] }
  0x76   : > { %2314 = vmatprep.subr.bf16.mxu1 %v4829_v58  ;;  %1824 = vmatmul.mubr.bf16.gmra.mrb[24].mxu0 %v494_v4  ;;  %v4880_v58 = vld [vmem:[%s6513_s1 + $0x464] ss:$16 sps:$4 sm:$0xff]   ;;  %v413_v33 = vld [vmem:[%s5183_s14 + $0x248] sm:$0xff] }
  0x77   : > { %1869 = vmatpush1.bf16.msra.mxu0 %v4836_v5  ;;  %1833 = vmatprep.mubr.bf16.mxu0 %v502_v6  ;;  %v468_v5 = vpack.c.bf16 %v377_v62, %v370_v61  ;;  %v4922_v49 = vld [vmem:[%s6513_s1 + $0x544] ss:$16 sps:$4 sm:$0xff]   ;;  %v4926_v61 = vld [vmem:[%s6513_s1 + $0x560] ss:$16 sps:$4 sm:$0xff]  }
  0x78   : > { %1870 = vmatprep.subr.bf16.mxu0 %v4844_v8  ;;  %v426_v62 = vld [vmem:[%s5183_s14 + $0x2b0] sm:$0xff] }
  0x79   : > { %2315 = vmatpush1.bf16.msra.mxu1 %v4827_v1  ;;  %v392_v1 = vld [vmem:[%s5183_s14 + $0x1a0] sm:$0xff] }
  0x7a   : > { %2316 = vmatprep.subr.bf16.mxu1 %v4835_v3  ;;  %v4875_v3 = vld [vmem:[%s6513_s1 + $0x428] ss:$16 sps:$4 sm:$0xff]   ;;  %v476_v8 = vpack.c.bf16 %v392_v1, %v385_v0  ;;  %v4934_v0 = vld [vmem:[%s6513_s1 + $0x584] ss:$16 sps:$4 sm:$0xff]  }
  0x7b   : > { %1871 = vmatpush1.bf16.msra.mxu0 %v4842_v11  ;;  %v4889_v11 = vld [vmem:[%s6513_s1 + $0x46c] ss:$16 sps:$4 sm:$0xff]  }
  0x7c   : > { %2266 = vmatmul.mubr.bf16.gmra.mrb[52].mxu1 %v487_v52  ;;  %1872 = vmatprep.subr.bf16.mxu0 %v4850_v15  ;;  %v4871_v52 = vld [vmem:[%s6513_s1 + $0x40c] ss:$16 sps:$4 sm:$0xff]  }
  0x7d   : > { %2317 = vmatpush1.bf16.msra.mxu1 %v4833_v9  ;;  %2275 = vmatprep.mubr.bf16.mxu1 %v495_v54  ;;  %v4869_v54 = vld [vmem:[%s6513_s1 + $0x408] ss:$16 sps:$4 sm:$0xff]   ;;  %v4892_v9 = vld [vmem:[%s6513_s1 + $0x4a4] ss:$16 sps:$4 sm:$0xff]  }
  0x7e   : > { %2318 = vmatprep.subr.bf16.mxu1 %v4841_v10  ;;  %1834 = vmatmul.mubr.bf16.gmra.mrb[28].mxu0 %v501_v21  ;;  %v4881_v10 = vld [vmem:[%s6513_s1 + $0x448] ss:$16 sps:$4 sm:$0xff]  }
  0x7f   : > { %1873 = vmatpush1.bf16.msra.mxu0 %v4848_v22  ;;  %1876 = vmatprep.mubr.bf16.mxu0 %v455_v24  ;;  %v391_v15 = vld [vmem:[%s5183_s14 + $0x198] sm:$0xff]  ;;  %v441_v1 = vld [vmem:[%s5183_s14 + $0x328] sm:$0xff] }
  0x80   : > { %1874 = vmatprep.subr.bf16.mxu0 %v4856_v26  ;;  %v475_v22 = vpack.c.bf16 %v391_v15, %v384_v13  ;;  %v4904_v26 = vld [vmem:[%s6513_s1 + $0x4e4] ss:$16 sps:$4 sm:$0xff]   ;;  %v4938_v13 = vld [vmem:[%s6513_s1 + $0x5a0] ss:$16 sps:$4 sm:$0xff]  }
  0x81   : > { %2319 = vmatpush1.bf16.msra.mxu1 %v4839_v18  ;;  %v406_v18 = vld [vmem:[%s5183_s14 + $0x210] sm:$0xff]  ;;  %v440_v15 = vld [vmem:[%s5183_s14 + $0x320] sm:$0xff] }
  0x82   : > { %2320 = vmatprep.subr.bf16.mxu1 %v4847_v19  ;;  %v4887_v19 = vld [vmem:[%s6513_s1 + $0x468] ss:$16 sps:$4 sm:$0xff]  }
  0x83   : > { %1875 = vmatpush1.bf16.msra.mxu0 %v4854_v28  ;;  %v4901_v28 = vld [vmem:[%s6513_s1 + $0x4ac] ss:$16 sps:$4 sm:$0xff]  }
  0x84   : > { %2276 = vmatmul.mubr.bf16.gmra.mrb[56].mxu1 %v494_v4  ;;  %1957 = vmatprep.subr.bf16.mxu0 %v4862_v31  ;;  %v4883_v4 = vld [vmem:[%s6513_s1 + $0x44c] ss:$16 sps:$4 sm:$0xff]  }
  0x85   : > { %2321 = vmatpush1.bf16.msra.mxu1 %v4845_v25  ;;  %2285 = vmatprep.mubr.bf16.mxu1 %v502_v6  ;;  %v4884_v6 = vld [vmem:[%s6513_s1 + $0x480] ss:$16 sps:$4 sm:$0xff]   ;;  %v483_v25 = vpack.c.bf16 %v406_v18, %v399_v17  ;;  %v405_v31 = vld [vmem:[%s5183_s14 + $0x208] sm:$0xff]  ;;  %v4946_v17 = vld [vmem:[%s6513_s1 + $0x5c4] ss:$16 sps:$4 sm:$0xff]  }
  0x86   : > { %2322 = vmatprep.subr.bf16.mxu1 %v4853_v27  ;;  %1877 = vmatmul.mubr.bf16.vlgmr.msra.gmra.mrb[0].mxu0 %v454_v37  ;;  %v4893_v27 = vld [vmem:[%s6513_s1 + $0x488] ss:$16 sps:$4 sm:$0xff]  }
  0x87   : > { %1958 = vmatpush1.bf16.msra.mxu0 %v4860_v39  ;;  %1886 = vmatprep.mubr.bf16.mxu0 %v462_v40  ;;  %v482_v39 = vpack.c.bf16 %v405_v31, %v398_v30  ;;  %v345_v18 = vld [vmem:[%s5183_s14 + $0x28] sm:$0xff]  ;;  %v4950_v30 = vld [vmem:[%s6513_s1 + $0x5e0] ss:$16 sps:$4 sm:$0xff]  }
  0x88   : > { %1959 = vmatprep.subr.bf16.mxu0 %v4868_v43  ;;  %v4905_v43 = vld [vmem:[%s6513_s1 + $0x4c8] ss:$16 sps:$4 sm:$0xff]   ;;  %v344_v31 = vld [vmem:[%s5183_s14 + $0x20] sm:$0xff] }
  0x89   : > { %2323 = vmatpush1.bf16.msra.mxu1 %v4851_v35  ;;  %v420_v35 = vld [vmem:[%s5183_s14 + $0x280] sm:$0xff] }
  0x8a   : > { %2324 = vmatprep.subr.bf16.mxu1 %v4859_v36  ;;  %v4899_v36 = vld [vmem:[%s6513_s1 + $0x4a8] ss:$16 sps:$4 sm:$0xff]  }
  0x8b   : > { %1960 = vmatpush1.bf16.msra.mxu0 %v4866_v44  ;;  %v4913_v44 = vld [vmem:[%s6513_s1 + $0x4ec] ss:$16 sps:$4 sm:$0xff]  }
  0x8c   : > { %2286 = vmatmul.mubr.bf16.gmra.mrb[60].mxu1 %v501_v21  ;;  %1961 = vmatprep.subr.bf16.mxu0 %v4874_v48  ;;  %v4895_v21 = vld [vmem:[%s6513_s1 + $0x48c] ss:$16 sps:$4 sm:$0xff]  }
  0x8d   : > { %2325 = vmatpush1.bf16.msra.mxu1 %v4857_v41  ;;  %2328 = vmatprep.mubr.bf16.mxu1 %v455_v24  ;;  %v4896_v24 = vld [vmem:[%s6513_s1 + $0x4c0] ss:$16 sps:$4 sm:$0xff]   ;;  %v490_v41 = vpack.c.bf16 %v420_v35, %v413_v33  ;;  %v419_v48 = vld [vmem:[%s5183_s14 + $0x278] sm:$0xff] }
  0x8e   : > { %2326 = vmatprep.subr.bf16.mxu1 %v4865_v42  ;;  %1887 = vmatmul.mubr.bf16.gmra.mrb[4].mxu0 %v461_v53  ;;  %v4916_v42 = vld [vmem:[%s6513_s1 + $0x524] ss:$16 sps:$4 sm:$0xff]   ;;  %v359_v33 = vld [vmem:[%s5183_s14 + $0x98] sm:$0xff] }
  0x8f   : > { %1962 = vmatpush1.bf16.msra.mxu0 %v4872_v55  ;;  %1896 = vmatprep.mubr.bf16.mxu0 %v469_v57  ;;  %v4917_v55 = vld [vmem:[%s6513_s1 + $0x508] ss:$16 sps:$4 sm:$0xff]   ;;  %v366_v35 = vld [vmem:[%s5183_s14 + $0xd0] sm:$0xff] }
  0x90   : > { %1963 = vmatprep.subr.bf16.mxu0 %v4880_v58  ;;  %v4928_v58 = vld [vmem:[%s6513_s1 + $0x564] ss:$16 sps:$4 sm:$0xff]  }
  0x91   : > { %2327 = vmatpush1.bf16.msra.mxu1 %v4863_v51  ;;  %v434_v51 = vld [vmem:[%s5183_s14 + $0x2f0] sm:$0xff] }
  0x92   : > { %2409 = vmatprep.subr.bf16.mxu1 %v4871_v52  ;;  %v4911_v52 = vld [vmem:[%s6513_s1 + $0x4e8] ss:$16 sps:$4 sm:$0xff]  }
  0x93   : > { %1964 = vmatpush1.bf16.msra.mxu0 %v4878_v60  ;;  %v4925_v60 = vld [vmem:[%s6513_s1 + $0x52c] ss:$16 sps:$4 sm:$0xff]  }
  0x94   : > { %2329 = vmatmul.mubr.bf16.vlgmr.msra.gmra.mrb[32].mxu1 %v454_v37  ;;  %1965 = vmatprep.subr.bf16.mxu0 %v4886_v63  ;;  %v4907_v37 = vld [vmem:[%s6513_s1 + $0x4cc] ss:$16 sps:$4 sm:$0xff]  }
  0x95   : > { %2410 = vmatpush1.bf16.msra.mxu1 %v4869_v54  ;;  %2338 = vmatprep.mubr.bf16.mxu1 %v462_v40  ;;  %v4908_v40 = vld [vmem:[%s6513_s1 + $0x500] ss:$16 sps:$4 sm:$0xff]   ;;  %v489_v54 = vpack.c.bf16 %v419_v48, %v412_v47  ;;  %v433_v63 = vld [vmem:[%s5183_s14 + $0x2e8] sm:$0xff] }
  0x96   : > { %2411 = vmatprep.subr.bf16.mxu1 %v4877_v59  ;;  %1897 = vmatmul.mubr.bf16.gmra.mrb[8].mxu0 %v468_v5  ;;  %v497_v59 = vpack.c.bf16 %v434_v51, %v427_v50  ;;  %v380_v47 = vld [vmem:[%s5183_s14 + $0x140] sm:$0xff]  ;;  %v4956_v50 = vld [vmem:[%s6513_s1 + $0x5e8] ss:$16 sps:$4 sm:$0xff]   ;;  %v4967_v51 = vld [vmem:[%s6515_s3 + $0x14] ss:$8 sps:$4 sm:$0xff]  }
  0x97   : > { %1966 = vmatpush1.bf16.msra.mxu0 %v4884_v6  ;;  %1906 = vmatprep.mubr.bf16.mxu0 %v476_v8  ;;  %v4932_v6 = vld [vmem:[%s6513_s1 + $0x580] ss:$16 sps:$4 sm:$0xff]  }
  0x98   : > { %1967 = vmatprep.subr.bf16.mxu0 %v4892_v9  ;;  %v4940_v9 = vld [vmem:[%s6513_s1 + $0x5a4] ss:$16 sps:$4 sm:$0xff]   ;;  %v4962_v48 = vld [vmem:[%s6515_s3] ss:$8 sps:$4 sm:$0xff]  }
  0x99   : > { %2412 = vmatpush1.bf16.msra.mxu1 %v4875_v3  ;;  %v448_v3 = vld [vmem:[%s5183_s14 + $0x360] sm:$0xff] }
  0x9a   : > { %2413 = vmatprep.subr.bf16.mxu1 %v4883_v4  ;;  %v4923_v4 = vld [vmem:[%s6513_s1 + $0x528] ss:$16 sps:$4 sm:$0xff]  }
  0x9b   : > { %1968 = vmatpush1.bf16.msra.mxu0 %v4890_v12  ;;  %v4937_v12 = vld [vmem:[%s6513_s1 + $0x56c] ss:$16 sps:$4 sm:$0xff]  }
  0x9c   : > { %2339 = vmatmul.mubr.bf16.gmra.mrb[36].mxu1 %v461_v53  ;;  %1969 = vmatprep.subr.bf16.mxu0 %v4898_v16  ;;  %v4919_v53 = vld [vmem:[%s6513_s1 + $0x50c] ss:$16 sps:$4 sm:$0xff]  }
  0x9d   : > { %2414 = vmatpush1.bf16.msra.mxu1 %v4881_v10  ;;  %2348 = vmatprep.mubr.bf16.mxu1 %v469_v57  ;;  %v4920_v57 = vld [vmem:[%s6513_s1 + $0x540] ss:$16 sps:$4 sm:$0xff]   ;;  %v4929_v10 = vld [vmem:[%s6513_s1 + $0x548] ss:$16 sps:$4 sm:$0xff]  }
  0x9e   : > { %2415 = vmatprep.subr.bf16.mxu1 %v4889_v11  ;;  %1907 = vmatmul.mubr.bf16.gmra.mrb[12].mxu0 %v475_v22  ;;  %v504_v11 = vpack.c.bf16 %v448_v3, %v441_v1  ;;  %v447_v16 = vld [vmem:[%s5183_s14 + $0x358] sm:$0xff] }
  0x9f   : > { %1970 = vmatpush1.bf16.msra.mxu0 %v4896_v24  ;;  %1916 = vmatprep.mubr.bf16.mxu0 %v483_v25  ;;  %v4944_v24 = vld [vmem:[%s6513_s1 + $0x5c0] ss:$16 sps:$4 sm:$0xff]  }
  0xa0   : > { %1971 = vmatprep.subr.bf16.mxu0 %v4904_v26  ;;  %v4952_v26 = vld [vmem:[%s6513_s1 + $0x5e4] ss:$16 sps:$4 sm:$0xff]   ;;  %v4971_v1 = vld [vmem:[%s6515_s3 + $0x30] ss:$8 sps:$4 sm:$0xff]  }
  0xa1   : > { %2416 = vmatpush1.bf16.msra.mxu1 %v4887_v19  ;;  %v352_v19 = vld [vmem:[%s5183_s14 + $0x60] sm:$0xff] }
  0xa2   : > { %2417 = vmatprep.subr.bf16.mxu1 %v4895_v21  ;;  %v4935_v21 = vld [vmem:[%s6513_s1 + $0x568] ss:$16 sps:$4 sm:$0xff]  }
  0xa3   : > { %1972 = vmatpush1.bf16.msra.mxu0 %v4902_v29  ;;  %v4949_v29 = vld [vmem:[%s6513_s1 + $0x5ac] ss:$16 sps:$4 sm:$0xff]  }
  0xa4   : > { %2349 = vmatmul.mubr.bf16.gmra.mrb[40].mxu1 %v468_v5  ;;  %1973 = vmatprep.subr.bf16.mxu0 %v4910_v32  ;;  %v4931_v5 = vld [vmem:[%s6513_s1 + $0x54c] ss:$16 sps:$4 sm:$0xff]  }
  0xa5   : > { %2418 = vmatpush1.bf16.msra.mxu1 %v4893_v27  ;;  %2358 = vmatprep.mubr.bf16.mxu1 %v476_v8  ;;  %v496_v8 = vpack.c.bf16 %v433_v63, %v426_v62  ;;  %v4941_v27 = vld [vmem:[%s6513_s1 + $0x588] ss:$16 sps:$4 sm:$0xff]   ;;  %v394_v63 = vld [vmem:[%s5183_s14 + $0x1b0] sm:$0xff] }
  0xa6   : > { %2419 = vmatprep.subr.bf16.mxu1 %v4901_v28  ;;  %1917 = vmatmul.mubr.bf16.gmra.mrb[16].mxu0 %v482_v39  ;;  %v457_v28 = vpack.c.bf16 %v352_v19, %v345_v18  ;;  %v351_v32 = vld [vmem:[%s5183_s14 + $0x58] sm:$0xff]  ;;  %v400_v18 = vld [vmem:[%s5183_s14 + $0x1e0] sm:$0xff] }
  0xa7   : > { %1974 = vmatpush1.bf16.msra.mxu0 %v4908_v40  ;;  %1926 = vmatprep.mubr.bf16.mxu0 %v490_v41  ;;  %v4953_v40 = vld [vmem:[%s6513_s1 + $0x5c8] ss:$16 sps:$4 sm:$0xff]  }
  0xa8   : > { %1975 = vmatprep.subr.bf16.mxu0 %v4916_v42  ;;  %v4958_v42 = vld [vmem:[%s6513_s1 + $0x5ec] ss:$16 sps:$4 sm:$0xff]  }
  0xa9   : > { %2420 = vmatpush1.bf16.msra.mxu1 %v4899_v36  ;;  %v4947_v36 = vld [vmem:[%s6513_s1 + $0x5a8] ss:$16 sps:$4 sm:$0xff]  }
  0xaa   : > { %2421 = vmatprep.subr.bf16.mxu1 %v4907_v37  ;;  %v4955_v37 = vld [vmem:[%s6513_s1 + $0x5cc] ss:$16 sps:$4 sm:$0xff]  }
  0xab   : > { %1976 = vmatpush1.bf16.msra.mxu0 %v4914_v46  ;;  %v373_v46 = vld [vmem:[%s5183_s14 + $0x108] sm:$0xff]  ;;  %v387_v62 = vld [vmem:[%s5183_s14 + $0x178] sm:$0xff] }
  0xac   : > { %2359 = vmatmul.mubr.bf16.gmra.mrb[44].mxu1 %v475_v22  ;;  %1977 = vmatprep.subr.bf16.mxu0 %v4922_v49  ;;  %v4943_v22 = vld [vmem:[%s6513_s1 + $0x58c] ss:$16 sps:$4 sm:$0xff]  }
  0xad   : > { %2422 = vmatpush1.bf16.msra.mxu1 %v4905_v43  ;;  %2368 = vmatprep.mubr.bf16.mxu1 %v483_v25  ;;  %v503_v25 = vpack.c.bf16 %v447_v16, %v440_v15  ;;  %v358_v43 = vld [vmem:[%s5183_s14 + $0x90] sm:$0xff]  ;;  %v4964_v49 = vld [vmem:[%s6515_s3 + $0x4] ss:$8 sps:$4 sm:$0xff]   ;;  %v407_v19 = vld [vmem:[%s5183_s14 + $0x218] sm:$0xff] }
  0xae   : > { %2423 = vmatprep.subr.bf16.mxu1 %v4913_v44  ;;  %1927 = vmatmul.mubr.bf16.gmra.mrb[20].mxu0 %v489_v54  ;;  %v365_v44 = vld [vmem:[%s5183_s14 + $0xc8] sm:$0xff]  ;;  %v4977_v16 = vld [vmem:[%s6515_s3 + $0x50] ss:$8 sps:$4 sm:$0xff]  }
  0xaf   : > { %1978 = vmatpush1.bf16.msra.mxu0 %v4920_v57  ;;  %1936 = vmatprep.mubr.bf16.mxu0 %v497_v59  ;;  %v4970_v57 = vld [vmem:[%s6515_s3 + $0x24] ss:$8 sps:$4 sm:$0xff]  }
  0xb0   : > { %1979 = vmatprep.subr.bf16.mxu0 %v4928_v58  ;;  %v4959_v58 = vld [vmem:[%s6513_s1 + $0x608] ss:$16 sps:$4 sm:$0xff]  }
  0xb1   : > { %2424 = vmatpush1.bf16.msra.mxu1 %v4911_v52  ;;  %v4961_v52 = vld [vmem:[%s6513_s1 + $0x60c] ss:$16 sps:$4 sm:$0xff]  }
  0xb2   : > { %2425 = vmatprep.subr.bf16.mxu1 %v4919_v53  ;;  %v463_v53 = vpack.c.bf16 %v365_v44, %v358_v43 }
  0xb3   : > { %1980 = vmatpush1.bf16.msra.mxu0 %v4926_v61  ;;  %v4968_v61 = vld [vmem:[%s6515_s3 + $0x20] ss:$8 sps:$4 sm:$0xff]  }
  0xb4   : > { %2369 = vmatmul.mubr.bf16.gmra.mrb[48].mxu1 %v482_v39  ;;  %1981 = vmatprep.subr.bf16.mxu0 %v4934_v0  ;;  %v456_v39 = vpack.c.bf16 %v351_v32, %v344_v31  ;;  %v4973_v0 = vld [vmem:[%s6515_s3 + $0x34] ss:$8 sps:$4 sm:$0xff]   ;;  %v4988_v31 = vld [vmem:[%s6515_s3 + $0x84] ss:$8 sps:$4 sm:$0xff]  }
  0xb5   : > { %2426 = vmatpush1.bf16.msra.mxu1 %v4917_v55  ;;  %2378 = vmatprep.mubr.bf16.mxu1 %v490_v41  ;;  %v464_v41 = vpack.c.bf16 %v366_v35, %v359_v33  ;;  %v4965_v55 = vld [vmem:[%s6515_s3 + $0x10] ss:$8 sps:$4 sm:$0xff]  }
  0xb6   : > { %2427 = vmatprep.subr.bf16.mxu1 %v4925_v60  ;;  %1937 = vmatmul.mubr.bf16.gmra.mrb[24].mxu0 %v496_v8  ;;  %v379_v60 = vld [vmem:[%s5183_s14 + $0x138] sm:$0xff]  ;;  %v414_v35 = vld [vmem:[%s5183_s14 + $0x250] sm:$0xff] }
  0xb7   : > { %1982 = vmatpush1.bf16.msra.mxu0 %v4932_v6  ;;  %1946 = vmatprep.mubr.bf16.mxu0 %v504_v11  ;;  %v386_v6 = vld [vmem:[%s5183_s14 + $0x170] sm:$0xff] }
  0xb8   : > { %1983 = vmatprep.subr.bf16.mxu0 %v4940_v9  ;;  %v4974_v9 = vld [vmem:[%s6515_s3 + $0x40] ss:$8 sps:$4 sm:$0xff]  }
  0xb9   : > { %2428 = vmatpush1.bf16.msra.mxu1 %v4923_v4  ;;  %v478_v4 = vpack.c.bf16 %v394_v63, %v387_v62  ;;  %v5000_v63 = vld [vmem:[%s6515_s3 + $0xc4] ss:$8 sps:$4 sm:$0xff]  }
  0xba   : > { %2429 = vmatprep.subr.bf16.mxu1 %v4931_v5  ;;  %v4976_v5 = vld [vmem:[%s6515_s3 + $0x44] ss:$8 sps:$4 sm:$0xff]  }
  0xbb   : > { %1984 = vmatpush1.bf16.msra.mxu0 %v4938_v13 }
  0xbc   : > { %2379 = vmatmul.mubr.bf16.gmra.mrb[52].mxu1 %v489_v54  ;;  %1985 = vmatprep.subr.bf16.mxu0 %v4946_v17  ;;  %v471_v54 = vpack.c.bf16 %v380_v47, %v373_v46  ;;  %v4982_v17 = vld [vmem:[%s6515_s3 + $0x64] ss:$8 sps:$4 sm:$0xff]   ;;  %v4989_v46 = vld [vmem:[%s6515_s3 + $0x90] ss:$8 sps:$4 sm:$0xff]  }
  0xbd   : > { %2430 = vmatpush1.bf16.msra.mxu1 %v4929_v10  ;;  %2388 = vmatprep.mubr.bf16.mxu1 %v497_v59  ;;  %v372_v59 = vld [vmem:[%s5183_s14 + $0x100] sm:$0xff]  ;;  %v401_v10 = vld [vmem:[%s5183_s14 + $0x1e8] sm:$0xff] }
  0xbe   : > { %2431 = vmatprep.subr.bf16.mxu1 %v4937_v12  ;;  %1947 = vmatmul.mubr.bf16.gmra.mrb[28].mxu0 %v503_v25  ;;  %v470_v3 = vpack.c.bf16 %v379_v60, %v372_v59  ;;  %v4979_v12 = vld [vmem:[%s6515_s3 + $0x54] ss:$8 sps:$4 sm:$0xff]  }
  0xbf   : > { %1986 = vmatpush1.bf16.msra.mxu0 %v4944_v24  ;;  %1989 = vmatprep.mubr.bf16.mxu0 %v457_v28  ;;  %v422_v24 = vld [vmem:[%s5183_s14 + $0x290] sm:$0xff] }
  0xc0   : > { %1987 = vmatprep.subr.bf16.mxu0 %v4952_v26  ;;  %v484_v26 = vpack.c.bf16 %v407_v19, %v400_v18 }
  0xc1   : > { %2432 = vmatpush1.bf16.msra.mxu1 %v4935_v21  ;;  %v4980_v21 = vld [vmem:[%s6515_s3 + $0x60] ss:$8 sps:$4 sm:$0xff]  }
  0xc2   : > { %2433 = vmatprep.subr.bf16.mxu1 %v4943_v22  ;;  %v415_v22 = vld [vmem:[%s5183_s14 + $0x258] sm:$0xff] }
  0xc3   : > { %1988 = vmatpush1.bf16.msra.mxu0 %v4950_v30 }
  0xc4   : > { %2389 = vmatmul.mubr.bf16.gmra.mrb[56].mxu1 %v496_v8  ;;  %3127 = vmatprep.subr.bf16.mxu0 %v4964_v49  ;;  %v393_v8 = vld [vmem:[%s5183_s14 + $0x1a8] sm:$0xff] }
  0xc5   : > { %2434 = vmatpush1.bf16.msra.mxu1 %v4941_v27  ;;  %2398 = vmatprep.mubr.bf16.mxu1 %v504_v11  ;;  %v408_v11 = vld [vmem:[%s5183_s14 + $0x220] sm:$0xff]  ;;  %v477_v13 = vpack.c.bf16 %v393_v8, %v386_v6 }
  0xc6   : > { %2435 = vmatprep.subr.bf16.mxu1 %v4949_v29  ;;  %1990 = vmatmul.mubr.bf16.vlgmr.msra.gmra.mrb[0].mxu0 %v456_v39  ;;  %v485_v15 = vpack.c.bf16 %v408_v11, %v401_v10  ;;  %v4983_v29 = vld [vmem:[%s6515_s3 + $0x70] ss:$8 sps:$4 sm:$0xff]  }
  0xc7   : > { %1999 = vmatprep.mubr.bf16.mxu0 %v464_v41  ;;  %3128 = vmatpush1.bf16.msra.mxu0 %v4962_v48  ;;  %v4994_v48 = vld [vmem:[%s6515_s3 + $0xa4] ss:$8 sps:$4 sm:$0xff]  }
  0xc8   : > { %3129 = vmatprep.subr.bf16.mxu0 %v4967_v51  ;;  %v428_v51 = vld [vmem:[%s5183_s14 + $0x2c0] sm:$0xff] }
  0xc9   : > { %2436 = vmatpush1.bf16.msra.mxu1 %v4947_v36  ;;  %v421_v36 = vld [vmem:[%s5183_s14 + $0x288] sm:$0xff] }
  0xca   : > { %2437 = vmatprep.subr.bf16.mxu1 %v4955_v37  ;;  %v4986_v37 = vld [vmem:[%s6515_s3 + $0x80] ss:$8 sps:$4 sm:$0xff]  }
  0xcb   : > { %3130 = vmatpush1.bf16.msra.mxu0 %v4965_v55  ;;  %v450_v55 = vld [vmem:[%s5183_s14 + $0x370] sm:$0xff] }
  0xcc   : > { %2399 = vmatmul.mubr.bf16.gmra.mrb[60].mxu1 %v503_v25  ;;  %3131 = vmatprep.subr.bf16.mxu0 %v4970_v57  ;;  %v4985_v25 = vld [vmem:[%s6515_s3 + $0x74] ss:$8 sps:$4 sm:$0xff]  }
  0xcd   : > { %2438 = vmatpush1.bf16.msra.mxu1 %v4953_v40  ;;  %2441 = vmatprep.mubr.bf16.mxu1 %v457_v28  ;;  %v492_v28 = vpack.c.bf16 %v422_v24, %v415_v22  ;;  %v436_v40 = vld [vmem:[%s5183_s14 + $0x300] sm:$0xff]  ;;  %v4997_v57 = vld [vmem:[%s6515_s3 + $0xb4] ss:$8 sps:$4 sm:$0xff]  }
  0xce   : > { %2439 = vmatprep.subr.bf16.mxu1 %v4958_v42  ;;  %2000 = vmatmul.mubr.bf16.gmra.mrb[4].mxu0 %v463_v53  ;;  %v491_v42 = vpack.c.bf16 %v421_v36, %v414_v35 }
  0xcf   : > { %2009 = vmatprep.mubr.bf16.mxu0 %v471_v54  ;;  %3132 = vmatpush1.bf16.msra.mxu0 %v4968_v61  ;;  %v4995_v61 = vld [vmem:[%s6515_s3 + $0xb0] ss:$8 sps:$4 sm:$0xff]  }
  0xd0   : > { %3133 = vmatprep.subr.bf16.mxu0 %v4973_v0 }
  0xd1   : > { %2440 = vmatpush1.bf16.msra.mxu1 %v4956_v50 }
  0xd2   : > { %2522 = vmatprep.subr.bf16.mxu1 %v4961_v52  ;;  %v435_v52 = vld [vmem:[%s5183_s14 + $0x2f8] sm:$0xff] }
  0xd3   : > { %3134 = vmatpush1.bf16.msra.mxu0 %v4971_v1 }
  0xd4   : > { %2442 = vmatmul.mubr.bf16.vlgmr.msra.gmra.mrb[32].mxu1 %v456_v39  ;;  %3135 = vmatprep.subr.bf16.mxu0 %v4976_v5  ;;  %v429_v39 = vld [vmem:[%s5183_s14 + $0x2c8] sm:$0xff] }
  0xd5   : > { %2523 = vmatpush1.bf16.msra.mxu1 %v4959_v58  ;;  %2451 = vmatprep.mubr.bf16.mxu1 %v464_v41  ;;  %v4991_v41 = vld [vmem:[%s6515_s3 + $0x94] ss:$8 sps:$4 sm:$0xff]   ;;  %v499_v44 = vpack.c.bf16 %v436_v40, %v429_v39  ;;  %v498_v58 = vpack.c.bf16 %v435_v52, %v428_v51  ;;  %v4998_v5 = vld [vmem:[%s6515_s3 + $0xc0] ss:$8 sps:$4 sm:$0xff]   ;;  %v5007_v40 = vld [vmem:[%s6515_s3 + $0xf0] ss:$8 sps:$4 sm:$0xff]  }
  0xd6   : > { %2010 = vmatmul.mubr.bf16.gmra.mrb[8].mxu0 %v470_v3  ;;  %v5009_v39 = vld [vmem:[%s6515_s3 + $0xf4] ss:$8 sps:$4 sm:$0xff]  }
  0xd7   : > { %2019 = vmatprep.mubr.bf16.mxu0 %v478_v4  ;;  %3136 = vmatpush1.bf16.msra.mxu0 %v4974_v9 }
  0xd8   : > { %3137 = vmatprep.subr.bf16.mxu0 %v4979_v12 }
  0xdb   : > { %3138 = vmatpush1.bf16.msra.mxu0 %v4977_v16 }
  0xdc   : > { %2452 = vmatmul.mubr.bf16.gmra.mrb[36].mxu1 %v463_v53  ;;  %3139 = vmatprep.subr.bf16.mxu0 %v4982_v17  ;;  %v4992_v53 = vld [vmem:[%s6515_s3 + $0xa0] ss:$8 sps:$4 sm:$0xff]  }
  0xdd   : > { %2461 = vmatprep.mubr.bf16.mxu1 %v471_v54  ;;  %v443_v54 = vld [vmem:[%s5183_s14 + $0x338] sm:$0xff] }
  0xde   : > { %2020 = vmatmul.mubr.bf16.gmra.mrb[12].mxu0 %v477_v13  ;;  %v506_v60 = vpack.c.bf16 %v450_v55, %v443_v54 }
  0xdf   : > { %2029 = vmatprep.mubr.bf16.mxu0 %v485_v15  ;;  %3140 = vmatpush1.bf16.msra.mxu0 %v4980_v21 }
  0xe0   : > { %3141 = vmatprep.subr.bf16.mxu0 %v4985_v25 }
  0xe3   : > { %3142 = vmatpush1.bf16.msra.mxu0 %v4983_v29 }
  0xe4   : > { %2462 = vmatmul.mubr.bf16.gmra.mrb[40].mxu1 %v470_v3  ;;  %3143 = vmatprep.subr.bf16.mxu0 %v4988_v31  ;;  %v442_v3 = vld [vmem:[%s5183_s14 + $0x330] sm:$0xff] }
  0xe5   : > { %2471 = vmatprep.mubr.bf16.mxu1 %v478_v4  ;;  %v449_v4 = vld [vmem:[%s5183_s14 + $0x368] sm:$0xff] }
  0xe6   : > { %2030 = vmatmul.mubr.bf16.gmra.mrb[16].mxu0 %v484_v26  ;;  %v505_v6 = vpack.c.bf16 %v449_v4, %v442_v3 }
  0xe7   : > { %v5936_v27 = vpop.f32.mrb[0].mxu1  ;;  %2039 = vmatprep.mubr.bf16.mxu0 %v492_v28  ;;  %3144 = vmatpush1.bf16.msra.mxu0 %v4986_v37  ;;  %v5004_v37 = vld [vmem:[%s6515_s3 + $0xe0] ss:$8 sps:$4 sm:$0xff]  }
  0xe8   : > { %v5941_v30 = vpop.f32.mrb[1].mxu1  ;;  %3145 = vmatprep.subr.bf16.mxu0 %v4991_v41 }
  0xe9   : > { %v5946_v32 = vpop.f32.mrb[2].mxu1 }
  0xea   : > { %v5948_v33 = vpop.f32.mrb[3].mxu1 }
  0xeb   : > { %3146 = vmatpush1.bf16.msra.mxu0 %v4989_v46 }
  0xec   : > { %2472 = vmatmul.mubr.bf16.gmra.mrb[44].mxu1 %v477_v13  ;;  %3147 = vmatprep.subr.bf16.mxu0 %v4994_v48 }
  0xed   : > { %2481 = vmatprep.mubr.bf16.mxu1 %v485_v15 }
  0xee   : > { %2040 = vmatmul.mubr.bf16.gmra.mrb[20].mxu0 %v491_v42 }
  0xef   : > { %v5960_v43 = vpop.f32.mrb[4].mxu1  ;;  %2049 = vmatprep.mubr.bf16.mxu0 %v499_v44  ;;  %3148 = vmatpush1.bf16.msra.mxu0 %v4992_v53 }
  0xf0   : > { %v5965_v47 = vpop.f32.mrb[5].mxu1  ;;  %3149 = vmatprep.subr.bf16.mxu0 %v4997_v57 }
  0xf1   : > { %v5970_v49 = vpop.f32.mrb[6].mxu1 }
  0xf2   : > { %v5972_v50 = vpop.f32.mrb[7].mxu1 }
  0xf3   : > { %3150 = vmatpush1.bf16.msra.mxu0 %v4995_v61 }
  0xf4   : > { %2482 = vmatmul.mubr.bf16.gmra.mrb[48].mxu1 %v484_v26  ;;  %3151 = vmatprep.subr.bf16.mxu0 %v5000_v63 }
  0xf5   : > { %2491 = vmatprep.mubr.bf16.mxu1 %v492_v28  ;;  %v5003_v28 = vld [vmem:[%s6515_s3 + $0xd4] ss:$8 sps:$4 sm:$0xff]  }
  0xf6   : > { %2050 = vmatmul.mubr.bf16.gmra.mrb[24].mxu0 %v498_v58 }
  0xf7   : > { %v5984_v59 = vpop.f32.mrb[8].mxu1  ;;  %2059 = vmatprep.mubr.bf16.mxu0 %v506_v60  ;;  %3152 = vmatpush1.bf16.msra.mxu0 %v4998_v5 }
  0xf8   : > { %v5989_v62 = vpop.f32.mrb[9].mxu1  ;;  %3153 = vmatprep.subr.bf16.mxu0 %v5003_v28 }
  0xf9   : > { %v5994_v0 = vpop.f32.mrb[10].mxu1 }
  0xfa   : > { %v5996_v1 = vpop.f32.mrb[11].mxu1 }
  0xfc   : > { %2492 = vmatmul.mubr.bf16.gmra.mrb[52].mxu1 %v491_v42  ;;  %v6094_v42 = vld [vmem:[%s6514_s2] sm:$0xf] }
  0xfd   : > { %2501 = vmatprep.mubr.bf16.mxu1 %v499_v44 }
  0xfe   : > { %2060 = vmatmul.mubr.bf16.gmra.mrb[28].mxu0 %v505_v6 }
  0xff   : > { %v6003_v8 = vpop.f32.mrb[12].mxu1 }
 0x100   : > { %v6005_v9 = vpop.f32.mrb[13].mxu1 }
 0x101   : > { %v6007_v10 = vpop.f32.mrb[14].mxu1 }
 0x102   : > { %v6009_v11 = vpop.f32.mrb[15].mxu1 }
 0x104   : > { %2502 = vmatmul.mubr.bf16.gmra.mrb[56].mxu1 %v498_v58 }
 0x105   : > { %2511 = vmatprep.mubr.bf16.mxu1 %v506_v60 }
 0x107   : > { %v6011_v12 = vpop.f32.mrb[16].mxu1 }
 0x108   : > { %v6013_v13 = vpop.f32.mrb[17].mxu1 }
 0x109   : > { %v6015_v15 = vpop.f32.mrb[18].mxu1 }
 0x10a   : > { %v6017_v16 = vpop.f32.mrb[19].mxu1 }
 0x10c   : > { %2512 = vmatmul.mubr.bf16.gmra.mrb[60].mxu1 %v505_v6 }
 0x10d   : > { %2554 = vmatprep.mubr.bf16.mxu1 %v5090_v2 }
 0x10f   : > { %v6020_v17 = vpop.f32.mrb[20].mxu1 }
 0x110   : > { %v6022_v18 = vpop.f32.mrb[21].mxu1 }
 0x111   : > { %v6024_v19 = vpop.f32.mrb[22].mxu1 }
 0x112   : > { %v6026_v21 = vpop.f32.mrb[23].mxu1 }
 0x114   : > { %4110 = vmatmul.mubr.msk.bf16.vlgmr.msra.gmra.mrb[32].mxu1 %vm1706_vm0, %v5193_v14  ;;  %v5001_v14 = vld [vmem:[%s6515_s3 + $0xd0] ss:$8 sps:$4 sm:$0xff]  }
 0x115   : > { %2564 = vmatprep.mubr.bf16.mxu1 %v5090_v2  ;;  %3154 = vmatpush1.bf16.msra.mxu0 %v5001_v14 }
 0x117   : > { %v6031_v22 = vpop.f32.mrb[24].mxu1 }
 0x118   : > { %v6033_v24 = vpop.f32.mrb[25].mxu1 }
 0x119   : > { %v6035_v25 = vpop.f32.mrb[26].mxu1 }
 0x11a   : > { %v6037_v26 = vpop.f32.mrb[27].mxu1 }
 0x11c   : > { %4111 = vmatmul.mubr.msk.bf16.gmra.mrb[36].mxu1 %vm1706_vm0, %v5218_v23  ;;  %v5006_v23 = vld [vmem:[%s6515_s3 + $0xe4] ss:$8 sps:$4 sm:$0xff]  }
 0x11d   : > { %2574 = vmatprep.mubr.bf16.mxu1 %v5090_v2  ;;  %3155 = vmatprep.subr.bf16.mxu0 %v5006_v23 }
 0x11e   : > { %3156 = vmatpush1.bf16.msra.mxu0 %v5004_v37 }
 0x11f   : > { %v6048_v29 = vpop.f32.mrb[28].mxu1  ;;  %3157 = vmatprep.subr.bf16.mxu0 %v5009_v39 }
 0x120   : > { %v6050_v31 = vpop.f32.mrb[29].mxu1 }
 0x121   : > { %v6052_v35 = vpop.f32.mrb[30].mxu1 }
 0x122   : > { %v6057_v36 = vpop.f32.mrb[31].mxu1  ;;  %3158 = vmatpush1.bf16.msra.mxu0 %v5007_v40  ;;  %v5015_v40 = vld [vmem:[%s6515_s3 + $0x114] ss:$8 sps:$4 sm:$0xff]  }
 0x124   : > { %4112 = vmatmul.mubr.msk.bf16.gmra.mrb[40].mxu1 %vm1706_vm0, %v5249_v34  ;;  %v5012_v34 = vld [vmem:[%s6515_s3 + $0x104] ss:$8 sps:$4 sm:$0xff]  }
 0x125   : > { %2584 = vmatprep.mubr.bf16.mxu1 %v5090_v2  ;;  %3240 = vmatprep.subr.bf16.mxu0 %v5012_v34 }
 0x12c   : > { %4113 = vmatmul.mubr.msk.bf16.gmra.mrb[44].mxu1 %vm1706_vm0, %v5280_v45  ;;  %v706_v45 = vlaneseq }
 0x12d   : > { %2594 = vmatprep.mubr.bf16.mxu1 %v5090_v2 }
 0x12e   : > { %v6088_v41 = vshrl.u32 %v706_v45, 7 }
 0x134   : > { %4114 = vmatmul.mubr.msk.bf16.gmra.mrb[48].mxu1 %vm1706_vm0, %v5311_v56  ;;  %v708_v56 = vsub.s32 0, %v6088_v41 }
 0x135   : > { %2604 = vmatprep.mubr.bf16.mxu1 %v5090_v2 }
 0x13c   : > { %4115 = vmatmul.mubr.msk.bf16.gmra.mrb[52].mxu1 %vm1706_vm0, %v5346_v7  ;;  %v712_v7 = vsub.s32 1, %v6088_v41 }
 0x13d   : > { %2614 = vmatprep.mubr.bf16.mxu1 %v5090_v2 }
 0x144   : > { %4116 = vmatmul.mubr.msk.bf16.gmra.mrb[56].mxu1 %vm1706_vm0, %v5381_v20  ;;  %v6100_v20 = vrot.slane %v6094_v42, %v708_v56 }
 0x145   : > { %2624 = vmatprep.mubr.bf16.mxu1 %v5090_v2  ;;  %v6105_v2 = vrot.slane %v6094_v42, %v712_v7 }
 0x14c   : > { %4117 = vmatmul.mubr.msk.bf16.gmra.mrb[60].mxu1 %vm1706_vm0, %v5413_v38 }
 0x199   : > { %v1991_v38 = vpop.f32.mrb[0].mxu0 }
 0x19a   : > { %v4338_v44 = vadd.f32 %v1991_v38, %v6100_v20  ;;  %v1993_v46 = vpop.f32.mrb[1].mxu0 }
 0x19b   : > { %v4340_v48 = vadd.f32 %v1993_v46, %v6105_v2  ;;  %v1995_v51 = vpop.f32.mrb[2].mxu0  ;;  %v5013_v46 = vld [vmem:[%s6515_s3 + $0x110] ss:$8 sps:$4 sm:$0xff]  }
 0x19c   : > { %v4339_v52 = vadd.f32 %v4338_v44, %v5936_v27  ;;  %v4342_v53 = vadd.f32 %v1995_v51, %v6100_v20  ;;  %v1997_v54 = vpop.f32.mrb[3].mxu0  ;;  %v6131_v44 = vld [vmem:[%s6517_s5 + $0x40] sm:$0xff]  }
 0x19d   : > { %v4341_v55 = vadd.f32 %v4340_v48, %v5941_v30  ;;  %v4344_v57 = vadd.f32 %v1997_v54, %v6105_v2  ;;  %v5010_v30 = vld [vmem:[%s6515_s3 + $0x100] ss:$8 sps:$4 sm:$0xff]   ;;  %v5018_v51 = vld [vmem:[%s6515_s3 + $0x124] ss:$8 sps:$4 sm:$0xff]   ;;  %4322 = vmatprep.subr.bf16.mxu1 %v6131_v44 }
 0x19e   : > { %v4343_v58 = vadd.f32 %v4342_v53, %v5946_v32  ;;  %v2635_v61 = vmax.f32 %v4339_v52, 0.0 }
 0x19f   : > { %v4345_v60 = vadd.f32 %v4344_v57, %v5948_v33  ;;  %v2636_v3 = vmax.f32 %v4341_v55, 0.0 }
 0x1a0   : > { %v2639_v63 = vmax.f32 %v4343_v58, 0.0 }
 0x1a1   : > { %v2640_v4 = vmax.f32 %v4345_v60, 0.0  ;;  %v2001_v5 = vpop.f32.mrb[4].mxu0 }
 0x1a2   : > { %v2699_v6 = vpack.c.bf16 %v2639_v63, %v2635_v61  ;;  %v4346_v28 = vadd.f32 %v2001_v5, %v6100_v20  ;;  %v2003_v27 = vpop.f32.mrb[5].mxu0 }
 0x1a3   : > { %v4348_v14 = vadd.f32 %v2003_v27, %v6105_v2  ;;  %v2005_v23 = vpop.f32.mrb[6].mxu0  ;;  %v2700_v37 = vpack.c.bf16 %v2640_v4, %v2636_v3  ;;  %v5016_v3 = vld [vmem:[%s6515_s3 + $0x120] ss:$8 sps:$4 sm:$0xff]   ;;  %v5021_v27 = vld [vmem:[%s6515_s3 + $0x134] ss:$8 sps:$4 sm:$0xff]  }
 0x1a4   : > { %v4347_v32 = vadd.f32 %v4346_v28, %v5960_v43  ;;  %v4350_v33 = vadd.f32 %v2005_v23, %v6100_v20  ;;  %v2007_v39 = vpop.f32.mrb[7].mxu0  ;;  %v6161_v4 = vld [vmem:[%s6517_s5 + $0x8] sm:$0xff]  }
 0x1a5   : > { %v4349_v34 = vadd.f32 %v4348_v14, %v5965_v47  ;;  %v4352_v45 = vadd.f32 %v2007_v39, %v6105_v2  ;;  %3159 = vmatprep.mubr.bf16.mxu0 %v2700_v37  ;;  %v6140_v47 = vld [vmem:[%s6517_s5] sm:$0xff]   ;;  %v6171_v14 = vld [vmem:[%s6517_s5 + $0x50] sm:$0xff]  }
 0x1a6   : > { %v4351_v38 = vadd.f32 %v4350_v33, %v5970_v49  ;;  %3160 = vmatmul.mubr.bf16.vlgmr.msra.gmra.mrb[32].mxu0 %v2699_v6  ;;  %v2643_v48 = vmax.f32 %v4347_v32, 0.0  ;;  %4330 = vmatpush3.bf16.msra.mxu1 %v6140_v47  ;;  %v5019_v32 = vld [vmem:[%s6515_s3 + $0x130] ss:$8 sps:$4 sm:$0xff]  }
 0x1a7   : > { %v4353_v43 = vadd.f32 %v4352_v45, %v5972_v50  ;;  %3241 = vmatpush1.bf16.msra.mxu0 %v5010_v30  ;;  %v6149_v50 = vld [vmem:[%s6517_s5 + $0x48] sm:$0xff]   ;;  %v2644_v52 = vmax.f32 %v4349_v34, 0.0 }
 0x1a8   : > { %v2647_v49 = vmax.f32 %v4351_v38, 0.0  ;;  %3242 = vmatprep.subr.bf16.mxu0 %v5015_v40  ;;  %4323 = vmatprep.subr.bf16.mxu1 %v6149_v50 }
 0x1a9   : > { %v2648_v53 = vmax.f32 %v4353_v43, 0.0  ;;  %v2011_v54 = vpop.f32.mrb[8].mxu0 }
 0x1aa   : > { %v4354_v55 = vadd.f32 %v2011_v54, %v6100_v20  ;;  %v2013_v57 = vpop.f32.mrb[9].mxu0  ;;  %v2703_v58 = vpack.c.bf16 %v2647_v49, %v2643_v48  ;;  %4331 = vmatpush3.bf16.msra.mxu1 %v6161_v4 }
 0x1ab   : > { %v4356_v60 = vadd.f32 %v2013_v57, %v6105_v2  ;;  %v2015_v61 = vpop.f32.mrb[10].mxu0  ;;  %v2704_v63 = vpack.c.bf16 %v2648_v53, %v2644_v52  ;;  %3243 = vmatpush1.bf16.msra.mxu0 %v5013_v46  ;;  %4324 = vmatprep.subr.bf16.mxu1 %v6171_v14  ;;  %v5022_v52 = vld [vmem:[%s6515_s3 + $0x140] ss:$8 sps:$4 sm:$0xff]   ;;  %v6205_v53 = vld [vmem:[%s6517_s5 + $0x18] sm:$0xff]  }
 0x1ac   : > { %v4355_v5 = vadd.f32 %v4354_v55, %v5984_v59  ;;  %v4358_v6 = vadd.f32 %v2015_v61, %v6100_v20  ;;  %v2017_v28 = vpop.f32.mrb[11].mxu0  ;;  %3244 = vmatprep.subr.bf16.mxu0 %v5018_v51 }
 0x1ad   : > { %v4357_v23 = vadd.f32 %v4356_v60, %v5989_v62  ;;  %v4360_v37 = vadd.f32 %v2017_v28, %v6105_v2  ;;  %3169 = vmatprep.mubr.bf16.mxu0 %v2704_v63  ;;  %v6185_v62 = vld [vmem:[%s6517_s5 + $0x10] sm:$0xff]   ;;  %v6215_v60 = vld [vmem:[%s6517_s5 + $0x60] sm:$0xff]  }
 0x1ae   : > { %v4359_v59 = vadd.f32 %v4358_v6, %v5994_v0  ;;  %3170 = vmatmul.mubr.bf16.gmra.mrb[36].mxu0 %v2703_v58  ;;  %v2651_v33 = vmax.f32 %v4355_v5, 0.0  ;;  %v5024_v0 = vld [vmem:[%s6515_s3 + $0x144] ss:$8 sps:$4 sm:$0xff]   ;;  %4332 = vmatpush3.bf16.msra.mxu1 %v6185_v62  ;;  %v5027_v58 = vld [vmem:[%s6515_s3 + $0x154] ss:$8 sps:$4 sm:$0xff]  }
 0x1af   : > { %v4361_v30 = vadd.f32 %v4360_v37, %v5996_v1  ;;  %3245 = vmatpush1.bf16.msra.mxu0 %v5016_v3  ;;  %v6193_v1 = vld [vmem:[%s6517_s5 + $0x58] sm:$0xff]   ;;  %v2652_v40 = vmax.f32 %v4357_v23, 0.0 }
 0x1b0   : > { %v2655_v39 = vmax.f32 %v4359_v59, 0.0  ;;  %3246 = vmatprep.subr.bf16.mxu0 %v5021_v27  ;;  %4325 = vmatprep.subr.bf16.mxu1 %v6193_v1  ;;  %v5025_v5 = vld [vmem:[%s6515_s3 + $0x150] ss:$8 sps:$4 sm:$0xff]  }
 0x1b1   : > { %v2656_v34 = vmax.f32 %v4361_v30, 0.0  ;;  %v2021_v45 = vpop.f32.mrb[12].mxu0 }
 0x1b2   : > { %v4362_v38 = vadd.f32 %v2021_v45, %v6100_v20  ;;  %v2023_v43 = vpop.f32.mrb[13].mxu0  ;;  %v2707_v46 = vpack.c.bf16 %v2655_v39, %v2651_v33  ;;  %4333 = vmatpush3.bf16.msra.mxu1 %v6205_v53 }
 0x1b3   : > { %v4364_v48 = vadd.f32 %v2023_v43, %v6105_v2  ;;  %v2025_v49 = vpop.f32.mrb[14].mxu0  ;;  %v2708_v51 = vpack.c.bf16 %v2656_v34, %v2652_v40  ;;  %3247 = vmatpush1.bf16.msra.mxu0 %v5019_v32  ;;  %4326 = vmatprep.subr.bf16.mxu1 %v6215_v60  ;;  %v5028_v40 = vld [vmem:[%s6515_s3 + $0x160] ss:$8 sps:$4 sm:$0xff]   ;;  %v5033_v43 = vld [vmem:[%s6515_s3 + $0x174] ss:$8 sps:$4 sm:$0xff]  }
 0x1b4   : > { %v4363_v54 = vadd.f32 %v4362_v38, %v6003_v8  ;;  %v4366_v55 = vadd.f32 %v2025_v49, %v6100_v20  ;;  %v2027_v57 = vpop.f32.mrb[15].mxu0  ;;  %3248 = vmatprep.subr.bf16.mxu0 %v5024_v0 }
 0x1b5   : > { %v4365_v61 = vadd.f32 %v4364_v48, %v6005_v9  ;;  %v4368_v63 = vadd.f32 %v2027_v57, %v6105_v2  ;;  %3179 = vmatprep.mubr.bf16.mxu0 %v2708_v51  ;;  %v6229_v9 = vld [vmem:[%s6517_s5 + $0x20] sm:$0xff]  }
 0x1b6   : > { %v4367_v8 = vadd.f32 %v4366_v55, %v6007_v10  ;;  %3180 = vmatmul.mubr.bf16.gmra.mrb[40].mxu0 %v2707_v46  ;;  %v2659_v6 = vmax.f32 %v4363_v54, 0.0  ;;  %v5030_v10 = vld [vmem:[%s6515_s3 + $0x164] ss:$8 sps:$4 sm:$0xff]   ;;  %4334 = vmatpush3.bf16.msra.mxu1 %v6229_v9 }
 0x1b7   : > { %v4369_v3 = vadd.f32 %v4368_v63, %v6009_v11  ;;  %3249 = vmatpush1.bf16.msra.mxu0 %v5022_v52  ;;  %v6237_v11 = vld [vmem:[%s6517_s5 + $0x68] sm:$0xff]   ;;  %v2660_v27 = vmax.f32 %v4365_v61, 0.0 }
 0x1b8   : > { %v2663_v28 = vmax.f32 %v4367_v8, 0.0  ;;  %3250 = vmatprep.subr.bf16.mxu0 %v5027_v58  ;;  %4327 = vmatprep.subr.bf16.mxu1 %v6237_v11 }
 0x1b9   : > { %v2664_v23 = vmax.f32 %v4369_v3, 0.0  ;;  %v2031_v37 = vpop.f32.mrb[16].mxu0 }
 0x1ba   : > { %v4370_v59 = vadd.f32 %v2031_v37, %v6100_v20  ;;  %v2033_v30 = vpop.f32.mrb[17].mxu0  ;;  %v2711_v32 = vpack.c.bf16 %v2663_v28, %v2659_v6 }
 0x1bb   : > { %v4372_v33 = vadd.f32 %v2033_v30, %v6105_v2  ;;  %v2035_v39 = vpop.f32.mrb[18].mxu0  ;;  %v2712_v0 = vpack.c.bf16 %v2664_v23, %v2660_v27  ;;  %3251 = vmatpush1.bf16.msra.mxu0 %v5025_v5  ;;  %v5034_v5 = vld [vmem:[%s6515_s3 + $0x180] ss:$8 sps:$4 sm:$0xff]   ;;  %v5039_v27 = vld [vmem:[%s6515_s3 + $0x194] ss:$8 sps:$4 sm:$0xff]  }
 0x1bc   : > { %v4371_v34 = vadd.f32 %v4370_v59, %v6011_v12  ;;  %v4374_v45 = vadd.f32 %v2035_v39, %v6100_v20  ;;  %v2037_v38 = vpop.f32.mrb[19].mxu0  ;;  %3252 = vmatprep.subr.bf16.mxu0 %v5030_v10  ;;  %v5031_v12 = vld [vmem:[%s6515_s3 + $0x170] ss:$8 sps:$4 sm:$0xff]  }
 0x1bd   : > { %v4373_v46 = vadd.f32 %v4372_v33, %v6013_v13  ;;  %v4376_v48 = vadd.f32 %v2037_v38, %v6105_v2  ;;  %3189 = vmatprep.mubr.bf16.mxu0 %v2712_v0  ;;  %v5036_v13 = vld [vmem:[%s6515_s3 + $0x184] ss:$8 sps:$4 sm:$0xff]  }
 0x1be   : > { %v4375_v49 = vadd.f32 %v4374_v45, %v6015_v15  ;;  %3190 = vmatmul.mubr.bf16.gmra.mrb[44].mxu0 %v2711_v32  ;;  %v2667_v52 = vmax.f32 %v4371_v34, 0.0 }
 0x1bf   : > { %v4377_v51 = vadd.f32 %v4376_v48, %v6017_v16  ;;  %3253 = vmatpush1.bf16.msra.mxu0 %v5028_v40  ;;  %v2668_v55 = vmax.f32 %v4373_v46, 0.0  ;;  %v5040_v46 = vld [vmem:[%s6515_s3 + $0x1a0] ss:$8 sps:$4 sm:$0xff]  }
 0x1c0   : > { %v2671_v54 = vmax.f32 %v4375_v49, 0.0  ;;  %3254 = vmatprep.subr.bf16.mxu0 %v5033_v43 }
 0x1c1   : > { %v2672_v57 = vmax.f32 %v4377_v51, 0.0  ;;  %v2041_v58 = vpop.f32.mrb[20].mxu0 }
 0x1c2   : > { %v4378_v15 = vadd.f32 %v2041_v58, %v6100_v20  ;;  %v2043_v61 = vpop.f32.mrb[21].mxu0  ;;  %v2715_v63 = vpack.c.bf16 %v2671_v54, %v2667_v52 }
 0x1c3   : > { %v4380_v16 = vadd.f32 %v2043_v61, %v6105_v2  ;;  %v2045_v8 = vpop.f32.mrb[22].mxu0  ;;  %v2716_v3 = vpack.c.bf16 %v2672_v57, %v2668_v55  ;;  %3255 = vmatpush1.bf16.msra.mxu0 %v5031_v12  ;;  %v5045_v12 = vld [vmem:[%s6515_s3 + $0x1b4] ss:$8 sps:$4 sm:$0xff]  }
 0x1c4   : > { %v4379_v6 = vadd.f32 %v4378_v15, %v6020_v17  ;;  %v4382_v28 = vadd.f32 %v2045_v8, %v6100_v20  ;;  %v2047_v10 = vpop.f32.mrb[23].mxu0  ;;  %3256 = vmatprep.subr.bf16.mxu0 %v5036_v13  ;;  %v5037_v17 = vld [vmem:[%s6515_s3 + $0x190] ss:$8 sps:$4 sm:$0xff]  }
 0x1c5   : > { %v4381_v23 = vadd.f32 %v4380_v16, %v6022_v18  ;;  %v4384_v37 = vadd.f32 %v2047_v10, %v6105_v2  ;;  %3199 = vmatprep.mubr.bf16.mxu0 %v2716_v3  ;;  %v5042_v18 = vld [vmem:[%s6515_s3 + $0x1a4] ss:$8 sps:$4 sm:$0xff]  }
 0x1c6   : > { %v4383_v59 = vadd.f32 %v4382_v28, %v6024_v19  ;;  %3200 = vmatmul.mubr.bf16.gmra.mrb[48].mxu0 %v2715_v63  ;;  %v2675_v32 = vmax.f32 %v4379_v6, 0.0  ;;  %v5046_v6 = vld [vmem:[%s6515_s3 + $0x1c0] ss:$8 sps:$4 sm:$0xff]  }
 0x1c7   : > { %v4385_v30 = vadd.f32 %v4384_v37, %v6026_v21  ;;  %3257 = vmatpush1.bf16.msra.mxu0 %v5034_v5  ;;  %v2676_v39 = vmax.f32 %v4381_v23, 0.0  ;;  %v5051_v23 = vld [vmem:[%s6515_s3 + $0x1d4] ss:$8 sps:$4 sm:$0xff]  }
 0x1c8   : > { %v2679_v33 = vmax.f32 %v4383_v59, 0.0  ;;  %3258 = vmatprep.subr.bf16.mxu0 %v5039_v27 }
 0x1c9   : > { %v2680_v0 = vmax.f32 %v4385_v30, 0.0  ;;  %v2051_v40 = vpop.f32.mrb[24].mxu0 }
 0x1ca   : > { %v4386_v19 = vadd.f32 %v2051_v40, %v6100_v20  ;;  %v2053_v34 = vpop.f32.mrb[25].mxu0  ;;  %v2719_v45 = vpack.c.bf16 %v2679_v33, %v2675_v32  ;;  %v720_v40 = vsub.s32 3, %v6088_v41 }
 0x1cb   : > { %v4388_v21 = vadd.f32 %v2053_v34, %v6105_v2  ;;  %v2055_v38 = vpop.f32.mrb[26].mxu0  ;;  %v2720_v43 = vpack.c.bf16 %v2680_v0, %v2676_v39  ;;  %3259 = vmatpush1.bf16.msra.mxu0 %v5037_v17  ;;  %v5057_v0 = vld [vmem:[%s6515_s3 + $0x1f4] ss:$8 sps:$4 sm:$0xff]  }
 0x1cc   : > { %v4387_v48 = vadd.f32 %v4386_v19, %v6031_v22  ;;  %v4390_v49 = vadd.f32 %v2055_v38, %v6100_v20  ;;  %v2057_v51 = vpop.f32.mrb[27].mxu0  ;;  %3260 = vmatprep.subr.bf16.mxu0 %v5042_v18  ;;  %v5043_v22 = vld [vmem:[%s6515_s3 + $0x1b0] ss:$8 sps:$4 sm:$0xff]  }
 0x1cd   : > { %v4389_v52 = vadd.f32 %v4388_v21, %v6033_v24  ;;  %v4392_v54 = vadd.f32 %v2057_v51, %v6105_v2  ;;  %3209 = vmatprep.mubr.bf16.mxu0 %v2720_v43  ;;  %v5048_v24 = vld [vmem:[%s6515_s3 + $0x1c4] ss:$8 sps:$4 sm:$0xff]   ;;  %v5055_v19 = vld [vmem:[%s6515_s3 + $0x1f0] ss:$8 sps:$4 sm:$0xff]  }
 0x1ce   : > { %v4391_v13 = vadd.f32 %v4390_v49, %v6035_v25  ;;  %3210 = vmatmul.mubr.bf16.gmra.mrb[52].mxu0 %v2719_v45  ;;  %v2683_v57 = vmax.f32 %v4387_v48, 0.0  ;;  %v6336_v45 = vrot.slane %v6094_v42, %v720_v40 }
 0x1cf   : > { %v4393_v55 = vadd.f32 %v4392_v54, %v6037_v26  ;;  %3261 = vmatpush1.bf16.msra.mxu0 %v5040_v46  ;;  %v2684_v15 = vmax.f32 %v4389_v52, 0.0 }
 0x1d0   : > { %v2687_v58 = vmax.f32 %v4391_v13, 0.0  ;;  %3262 = vmatprep.subr.bf16.mxu0 %v5045_v12 }
 0x1d1   : > { %v2688_v61 = vmax.f32 %v4393_v55, 0.0  ;;  %v2061_v63 = vpop.f32.mrb[28].mxu0 }
 0x1d2   : > { %v4394_v25 = vadd.f32 %v2061_v63, %v6100_v20  ;;  %v2063_v16 = vpop.f32.mrb[29].mxu0  ;;  %v2723_v8 = vpack.c.bf16 %v2687_v58, %v2683_v57 }
 0x1d3   : > { %v4396_v26 = vadd.f32 %v2063_v16, %v6105_v2  ;;  %v2065_v3 = vpop.f32.mrb[30].mxu0  ;;  %v2724_v5 = vpack.c.bf16 %v2688_v61, %v2684_v15  ;;  %3263 = vmatpush1.bf16.msra.mxu0 %v5043_v22 }
 0x1d4   : > { %v4395_v28 = vadd.f32 %v4394_v25, %v6048_v29  ;;  %v4398_v10 = vadd.f32 %v2065_v3, %v6100_v20  ;;  %v2067_v27 = vpop.f32.mrb[31].mxu0  ;;  %3264 = vmatprep.subr.bf16.mxu0 %v5048_v24  ;;  %v5049_v29 = vld [vmem:[%s6515_s3 + $0x1d0] ss:$8 sps:$4 sm:$0xff]  }
 0x1d5   : > { %v4397_v37 = vadd.f32 %v4396_v26, %v6050_v31  ;;  %v4400_v59 = vadd.f32 %v2067_v27, %v6105_v2  ;;  %3219 = vmatprep.mubr.bf16.mxu0 %v2724_v5  ;;  %v5054_v31 = vld [vmem:[%s6515_s3 + $0x1e4] ss:$8 sps:$4 sm:$0xff]  }
 0x1d6   : > { %v4399_v30 = vadd.f32 %v4398_v10, %v6052_v35  ;;  %3220 = vmatmul.mubr.bf16.gmra.mrb[56].mxu0 %v2723_v8  ;;  %v2691_v20 = vmax.f32 %v4395_v28, 0.0  ;;  %v5052_v35 = vld [vmem:[%s6515_s3 + $0x1e0] ss:$8 sps:$4 sm:$0xff]  }
 0x1d7   : > { %v4401_v17 = vadd.f32 %v4400_v59, %v6057_v36  ;;  %3265 = vmatpush1.bf16.msra.mxu0 %v5046_v6  ;;  %v2692_v33 = vmax.f32 %v4397_v37, 0.0  ;;  %v716_v36 = vsub.s32 2, %v6088_v41 }
 0x1d8   : > { %v2695_v32 = vmax.f32 %v4399_v30, 0.0  ;;  %3266 = vmatprep.subr.bf16.mxu0 %v5051_v23 }
 0x1d9   : > { %v2696_v2 = vmax.f32 %v4401_v17, 0.0  ;;  %v6333_v34 = vrot.slane %v6094_v42, %v716_v36 }
 0x1da   : > { %v2727_v18 = vpack.c.bf16 %v2695_v32, %v2691_v20 }
 0x1db   : > { %v2728_v39 = vpack.c.bf16 %v2696_v2, %v2692_v33  ;;  %3267 = vmatpush1.bf16.msra.mxu0 %v5049_v29 }
 0x1dc   : > { %3268 = vmatprep.subr.bf16.mxu0 %v5054_v31 }
 0x1dd   : > { %3229 = vmatprep.mubr.bf16.mxu0 %v2728_v39 }
 0x1de   : > { %3230 = vmatmul.mubr.bf16.gmra.mrb[60].mxu0 %v2727_v18 }
 0x1df   : > { %3269 = vmatpush1.bf16.msra.mxu0 %v5052_v35 }
 0x1e0   : > { %3270 = vmatprep.subr.bf16.mxu0 %v5057_v0 }
 0x1e3   : > { %3271 = vmatpush1.bf16.msra.mxu0 %v5055_v19 }
 0x1e4   : > { %4210 = vmatprep.subr.bf16.mxu0 %v6131_v44 }
 0x1e7   : > { %v2556_v21 = vpop.f32.mrb[32].mxu1 }
 0x1e8   : > { %v4402_v38 = vadd.f32 %v2556_v21, %v6333_v34  ;;  %v2558_v43 = vpop.f32.mrb[33].mxu1 }
 0x1e9   : > { %v4403_v46 = vadd.f32 %v2558_v43, %v6336_v45  ;;  %v2560_v48 = vpop.f32.mrb[34].mxu1 }
 0x1ea   : > { %v4404_v49 = vadd.f32 %v2560_v48, %v6333_v34  ;;  %v2562_v51 = vpop.f32.mrb[35].mxu1  ;;  %v2637_v52 = vmax.f32 %v4402_v38, 0.0 }
 0x1eb   : > { %v4405_v12 = vadd.f32 %v2562_v51, %v6336_v45  ;;  %v2638_v13 = vmax.f32 %v4403_v46, 0.0 }
 0x1ec   : > { %v2641_v54 = vmax.f32 %v4404_v49, 0.0 }
 0x1ed   : > { %v2642_v42 = vmax.f32 %v4405_v12, 0.0 }
 0x1ee   : > { %v2701_v55 = vpack.c.bf16 %v2641_v54, %v2637_v52 }
 0x1ef   : > { %v2702_v22 = vpack.c.bf16 %v2642_v42, %v2638_v13  ;;  %v2566_v57 = vpop.f32.mrb[36].mxu1 }
 0x1f0   : > { %v4406_v58 = vadd.f32 %v2566_v57, %v6333_v34  ;;  %v2568_v24 = vpop.f32.mrb[37].mxu1 }
 0x1f1   : > { %v4407_v44 = vadd.f32 %v2568_v24, %v6336_v45  ;;  %v2570_v15 = vpop.f32.mrb[38].mxu1  ;;  %3272 = vmatprep.mubr.bf16.mxu0 %v2702_v22 }
 0x1f2   : > { %v4408_v61 = vadd.f32 %v2570_v15, %v6333_v34  ;;  %v2572_v63 = vpop.f32.mrb[39].mxu1  ;;  %3273 = vmatmul.mubr.bf16.vlgmr.msra.gmra.mrb[32].mxu0 %v2701_v55  ;;  %v2645_v16 = vmax.f32 %v4406_v58, 0.0 }
 0x1f3   : > { %v4409_v25 = vadd.f32 %v2572_v63, %v6336_v45  ;;  %4211 = vmatpush3.bf16.msra.mxu0 %v6140_v47  ;;  %v2646_v26 = vmax.f32 %v4407_v44, 0.0 }
 0x1f4   : > { %v2649_v8 = vmax.f32 %v4408_v61, 0.0  ;;  %4212 = vmatprep.subr.bf16.mxu0 %v6149_v50 }
 0x1f5   : > { %v2650_v3 = vmax.f32 %v4409_v25, 0.0 }
 0x1f6   : > { %v2705_v5 = vpack.c.bf16 %v2649_v8, %v2645_v16 }
 0x1f7   : > { %v2706_v6 = vpack.c.bf16 %v2650_v3, %v2646_v26  ;;  %v2576_v28 = vpop.f32.mrb[40].mxu1  ;;  %4213 = vmatpush3.bf16.msra.mxu0 %v6161_v4 }
 0x1f8   : > { %v4410_v10 = vadd.f32 %v2576_v28, %v6333_v34  ;;  %v2578_v27 = vpop.f32.mrb[41].mxu1  ;;  %4214 = vmatprep.subr.bf16.mxu0 %v6171_v14 }
 0x1f9   : > { %v4411_v23 = vadd.f32 %v2578_v27, %v6336_v45  ;;  %v2580_v37 = vpop.f32.mrb[42].mxu1  ;;  %3282 = vmatprep.mubr.bf16.mxu0 %v2706_v6 }
 0x1fa   : > { %v4412_v47 = vadd.f32 %v2580_v37, %v6333_v34  ;;  %v2582_v59 = vpop.f32.mrb[43].mxu1  ;;  %3283 = vmatmul.mubr.bf16.gmra.mrb[36].mxu0 %v2705_v5  ;;  %v2653_v30 = vmax.f32 %v4410_v10, 0.0 }
 0x1fb   : > { %v4413_v50 = vadd.f32 %v2582_v59, %v6336_v45  ;;  %4215 = vmatpush3.bf16.msra.mxu0 %v6185_v62  ;;  %v2654_v4 = vmax.f32 %v4411_v23, 0.0 }
 0x1fc   : > { %v2657_v17 = vmax.f32 %v4412_v47, 0.0  ;;  %4216 = vmatprep.subr.bf16.mxu0 %v6193_v1 }
 0x1fd   : > { %v2658_v29 = vmax.f32 %v4413_v50, 0.0 }
 0x1fe   : > { %v2709_v20 = vpack.c.bf16 %v2657_v17, %v2653_v30 }
 0x1ff   : > { %v2710_v14 = vpack.c.bf16 %v2658_v29, %v2654_v4  ;;  %v2586_v32 = vpop.f32.mrb[44].mxu1  ;;  %4217 = vmatpush3.bf16.msra.mxu0 %v6205_v53 }
 0x200   : > { %v4414_v31 = vadd.f32 %v2586_v32, %v6333_v34  ;;  %v2588_v33 = vpop.f32.mrb[45].mxu1  ;;  %4218 = vmatprep.subr.bf16.mxu0 %v6215_v60 }
 0x201   : > { %v4415_v2 = vadd.f32 %v2588_v33, %v6336_v45  ;;  %v2590_v18 = vpop.f32.mrb[46].mxu1  ;;  %3292 = vmatprep.mubr.bf16.mxu0 %v2710_v14 }
 0x202   : > { %v4416_v62 = vadd.f32 %v2590_v18, %v6333_v34  ;;  %v2592_v39 = vpop.f32.mrb[47].mxu1  ;;  %3293 = vmatmul.mubr.bf16.gmra.mrb[40].mxu0 %v2709_v20  ;;  %v2661_v35 = vmax.f32 %v4414_v31, 0.0 }
 0x203   : > { %v4417_v1 = vadd.f32 %v2592_v39, %v6336_v45  ;;  %4219 = vmatpush3.bf16.msra.mxu0 %v6229_v9  ;;  %v2662_v53 = vmax.f32 %v4415_v2, 0.0 }
 0x204   : > { %v2665_v36 = vmax.f32 %v4416_v62, 0.0  ;;  %4220 = vmatprep.subr.bf16.mxu0 %v6237_v11 }
 0x205   : > { %v2666_v0 = vmax.f32 %v4417_v1, 0.0 }
 0x206   : > { %v2713_v40 = vpack.c.bf16 %v2665_v36, %v2661_v35 }
 0x207   : > { %v2714_v60 = vpack.c.bf16 %v2666_v0, %v2662_v53  ;;  %v2596_v19 = vpop.f32.mrb[48].mxu1  ;;  %v5069_v0 = vld [vmem:[%s6517_s5 + $0x28] sm:$0xff]  }
 0x208   : > { %v4418_v21 = vadd.f32 %v2596_v19, %v6333_v34  ;;  %v2598_v38 = vpop.f32.mrb[49].mxu1  ;;  %4221 = vmatpush3.bf16.msra.mxu0 %v5069_v0  ;;  %4335 = vmatpush3.bf16.msra.mxu1 %v5069_v0  ;;  %v5074_v19 = vld [vmem:[%s6519_s7] sm:$0xff]  }
 0x209   : > { %v4419_v43 = vadd.f32 %v2598_v38, %v6336_v45  ;;  %v2600_v46 = vpop.f32.mrb[50].mxu1  ;;  %3302 = vmatprep.mubr.bf16.mxu0 %v2714_v60  ;;  %v5073_v60 = vld [vmem:[%s6517_s5 + $0x38] sm:$0xff]  }
 0x20a   : > { %v4420_v48 = vadd.f32 %v2600_v46, %v6333_v34  ;;  %v2602_v49 = vpop.f32.mrb[51].mxu1  ;;  %3303 = vmatmul.mubr.bf16.gmra.mrb[44].mxu0 %v2713_v40  ;;  %v2669_v51 = vmax.f32 %v4418_v21, 0.0  ;;  %v5072_v40 = vld [vmem:[%s6517_s5 + $0x78] sm:$0xff]   ;;  %v2795_v21 = vld [vmem:[%s6516_s4] sm:$0x3] }
 0x20b   : > { %v4421_v9 = vadd.f32 %v2602_v49, %v6336_v45  ;;  %v2670_v12 = vmax.f32 %v4419_v43, 0.0  ;;  %v6404_v38 = vrot.slane %v2795_v21, %v708_v56  ;;  %v6408_v43 = vrot.slane %v2795_v21, %v712_v7 }
 0x20c   : > { %v2673_v11 = vmax.f32 %v4420_v48, 0.0 }
 0x20d   : > { %v2674_v52 = vmax.f32 %v4421_v9, 0.0 }
 0x20e   : > { %v2717_v54 = vpack.c.bf16 %v2673_v11, %v2669_v51 }
 0x20f   : > { %v2718_v13 = vpack.c.bf16 %v2674_v52, %v2670_v12  ;;  %v2606_v42 = vpop.f32.mrb[52].mxu1 }
 0x210   : > { %v4422_v55 = vadd.f32 %v2606_v42, %v6333_v34  ;;  %v2608_v22 = vpop.f32.mrb[53].mxu1 }
 0x211   : > { %v4423_v57 = vadd.f32 %v2608_v22, %v6336_v45  ;;  %v2610_v58 = vpop.f32.mrb[54].mxu1  ;;  %3312 = vmatprep.mubr.bf16.mxu0 %v2718_v13 }
 0x212   : > { %v4424_v24 = vadd.f32 %v2610_v58, %v6333_v34  ;;  %v2612_v44 = vpop.f32.mrb[55].mxu1  ;;  %3313 = vmatmul.mubr.bf16.gmra.mrb[48].mxu0 %v2717_v54  ;;  %v2677_v61 = vmax.f32 %v4422_v55, 0.0 }
 0x213   : > { %v4425_v15 = vadd.f32 %v2612_v44, %v6336_v45  ;;  %v2678_v25 = vmax.f32 %v4423_v57, 0.0 }
 0x214   : > { %v2681_v63 = vmax.f32 %v4424_v24, 0.0 }
 0x215   : > { %v2682_v16 = vmax.f32 %v4425_v15, 0.0 }
 0x216   : > { %v2721_v8 = vpack.c.bf16 %v2681_v63, %v2677_v61 }
 0x217   : > { %v2722_v26 = vpack.c.bf16 %v2682_v16, %v2678_v25  ;;  %v2616_v3 = vpop.f32.mrb[56].mxu1 }
 0x218   : > { %v4426_v5 = vadd.f32 %v2616_v3, %v6333_v34  ;;  %v2618_v6 = vpop.f32.mrb[57].mxu1 }
 0x219   : > { %v4427_v28 = vadd.f32 %v2618_v6, %v6336_v45  ;;  %v2620_v10 = vpop.f32.mrb[58].mxu1  ;;  %3322 = vmatprep.mubr.bf16.mxu0 %v2722_v26 }
 0x21a   : > { %v4428_v27 = vadd.f32 %v2620_v10, %v6333_v34  ;;  %v2622_v23 = vpop.f32.mrb[59].mxu1  ;;  %3323 = vmatmul.mubr.bf16.gmra.mrb[52].mxu0 %v2721_v8  ;;  %v2685_v47 = vmax.f32 %v4426_v5, 0.0 }
 0x21b   : > { %v4429_v37 = vadd.f32 %v2622_v23, %v6336_v45  ;;  %v2686_v50 = vmax.f32 %v4427_v28, 0.0 }
 0x21c   : > { %v2689_v59 = vmax.f32 %v4428_v27, 0.0 }
 0x21d   : > { %v2690_v30 = vmax.f32 %v4429_v37, 0.0 }
 0x21e   : > { %v2725_v17 = vpack.c.bf16 %v2689_v59, %v2685_v47 }
 0x21f   : > { %v2726_v4 = vpack.c.bf16 %v2690_v30, %v2686_v50  ;;  %v2626_v29 = vpop.f32.mrb[60].mxu1 }
 0x220   : > { %v4430_v20 = vadd.f32 %v2626_v29, %v6333_v34  ;;  %v2628_v14 = vpop.f32.mrb[61].mxu1 }
 0x221   : > { %v4431_v32 = vadd.f32 %v2628_v14, %v6336_v45  ;;  %v2630_v31 = vpop.f32.mrb[62].mxu1  ;;  %3332 = vmatprep.mubr.bf16.mxu0 %v2726_v4 }
 0x222   : > { %v4432_v33 = vadd.f32 %v2630_v31, %v6333_v34  ;;  %v2632_v2 = vpop.f32.mrb[63].mxu1  ;;  %3333 = vmatmul.mubr.bf16.gmra.mrb[56].mxu0 %v2725_v17  ;;  %v2693_v62 = vmax.f32 %v4430_v20, 0.0  ;;  %v5070_v34 = vld [vmem:[%s6517_s5 + $0x70] sm:$0xff]   ;;  %v5075_v31 = vld [vmem:[%s6519_s7 + $0x8] sm:$0xff]  }
 0x223   : > { %v4433_v18 = vadd.f32 %v2632_v2, %v6336_v45  ;;  %v2694_v1 = vmax.f32 %v4431_v32, 0.0  ;;  %v5071_v45 = vld [vmem:[%s6517_s5 + $0x30] sm:$0xff]   ;;  %4222 = vmatprep.subr.bf16.mxu0 %v5070_v34  ;;  %4328 = vmatprep.subr.bf16.mxu1 %v5070_v34 }
 0x224   : > { %v2697_v39 = vmax.f32 %v4432_v33, 0.0  ;;  %4223 = vmatpush3.bf16.msra.mxu0 %v5071_v45  ;;  %4336 = vmatpush3.bf16.msra.mxu1 %v5071_v45 }
 0x225   : > { %v2698_v35 = vmax.f32 %v4433_v18, 0.0  ;;  %4224 = vmatprep.subr.bf16.mxu0 %v5072_v40  ;;  %4329 = vmatprep.subr.bf16.mxu1 %v5072_v40 }
 0x226   : > { %v2729_v36 = vpack.c.bf16 %v2697_v39, %v2693_v62 }
 0x227   : > { %v2730_v53 = vpack.c.bf16 %v2698_v35, %v2694_v1 }
 0x228   : > { %4225 = vmatpush3.bf16.msra.mxu0 %v5073_v60  ;;  %4337 = vmatpush3.bf16.msra.mxu1 %v5073_v60 }
 0x229   : > { %3342 = vmatprep.mubr.bf16.mxu0 %v2730_v53  ;;  %4290 = vmatprep.subr.bf16.mxu1 %v5074_v19 }
 0x22a   : > { %3343 = vmatmul.mubr.bf16.gmra.mrb[60].mxu0 %v2729_v36  ;;  %v5076_v36 = vld [vmem:[%s6519_s7 + $0x10] sm:$0xff]  }
 0x2c5   : > { %v3274_v46 = vpop.f32.mrb[32].mxu0 }
 0x2c6   : > { %v4434_v48 = vadd.f32 %v3274_v46, %v6404_v38  ;;  %v3276_v49 = vpop.f32.mrb[33].mxu0 }
 0x2c7   : > { %v4435_v9 = vadd.f32 %v3276_v49, %v6408_v43  ;;  %v3278_v51 = vpop.f32.mrb[34].mxu0 }
 0x2c8   : > { %v4436_v11 = vadd.f32 %v3278_v51, %v6404_v38  ;;  %v3280_v12 = vpop.f32.mrb[35].mxu0  ;;  %v3353_v54 = vmax.f32 %v4434_v48, 0.0 }
 0x2c9   : > { %v4437_v52 = vadd.f32 %v3280_v12, %v6408_v43  ;;  %v3354_v56 = vmax.f32 %v4435_v9, 0.0 }
 0x2ca   : > { %v3355_v13 = vmax.f32 %v4436_v11, 0.0 }
 0x2cb   : > { %v3356_v42 = vmax.f32 %v4437_v52, 0.0 }
 0x2cc   : > { %v3385_v55 = vpack.c.bf16 %v3355_v13, %v3353_v54 }
 0x2cd   : > { %v3386_v41 = vpack.c.bf16 %v3356_v42, %v3354_v56  ;;  %v3284_v7 = vpop.f32.mrb[36].mxu0 }
 0x2ce   : > { %v4438_v22 = vadd.f32 %v3284_v7, %v6404_v38  ;;  %v3286_v57 = vpop.f32.mrb[37].mxu0 }
 0x2cf   : > { %v4439_v58 = vadd.f32 %v3286_v57, %v6408_v43  ;;  %v3288_v24 = vpop.f32.mrb[38].mxu0  ;;  %3568 = vmatprep.mubr.bf16.mxu0 %v3386_v41 }
 0x2d0   : > { %v4440_v44 = vadd.f32 %v3288_v24, %v6404_v38  ;;  %v3290_v15 = vpop.f32.mrb[39].mxu0  ;;  %3569 = vmatmul.mubr.bf16.vlgmr.msra.gmra.mrb[64].mxu0 %v3385_v55  ;;  %v3357_v63 = vmax.f32 %v4438_v22, 0.0 }
 0x2d1   : > { %v4441_v61 = vadd.f32 %v3290_v15, %v6408_v43  ;;  %v3358_v16 = vmax.f32 %v4439_v58, 0.0 }
 0x2d2   : > { %v3359_v25 = vmax.f32 %v4440_v44, 0.0 }
 0x2d3   : > { %v3360_v8 = vmax.f32 %v4441_v61, 0.0 }
 0x2d4   : > { %v3387_v26 = vpack.c.bf16 %v3359_v25, %v3357_v63 }
 0x2d5   : > { %v3388_v3 = vpack.c.bf16 %v3360_v8, %v3358_v16  ;;  %v3294_v5 = vpop.f32.mrb[40].mxu0 }
 0x2d6   : > { %v4442_v6 = vadd.f32 %v3294_v5, %v6404_v38  ;;  %v3296_v28 = vpop.f32.mrb[41].mxu0 }
 0x2d7   : > { %v4443_v10 = vadd.f32 %v3296_v28, %v6408_v43  ;;  %v3298_v27 = vpop.f32.mrb[42].mxu0  ;;  %3576 = vmatprep.mubr.bf16.mxu0 %v3388_v3 }
 0x2d8   : > { %v4444_v23 = vadd.f32 %v3298_v27, %v6404_v38  ;;  %v3300_v37 = vpop.f32.mrb[43].mxu0  ;;  %3577 = vmatmul.mubr.bf16.gmra.mrb[68].mxu0 %v3387_v26  ;;  %v3361_v59 = vmax.f32 %v4442_v6, 0.0 }
 0x2d9   : > { %v4445_v47 = vadd.f32 %v3300_v37, %v6408_v43  ;;  %v3362_v30 = vmax.f32 %v4443_v10, 0.0 }
 0x2da   : > { %v3363_v50 = vmax.f32 %v4444_v23, 0.0 }
 0x2db   : > { %v3364_v17 = vmax.f32 %v4445_v47, 0.0 }
 0x2dc   : > { %v3389_v4 = vpack.c.bf16 %v3363_v50, %v3361_v59 }
 0x2dd   : > { %v3390_v29 = vpack.c.bf16 %v3364_v17, %v3362_v30  ;;  %v3304_v20 = vpop.f32.mrb[44].mxu0 }
 0x2de   : > { %v4446_v14 = vadd.f32 %v3304_v20, %v6404_v38  ;;  %v3306_v32 = vpop.f32.mrb[45].mxu0 }
 0x2df   : > { %v4447_v33 = vadd.f32 %v3306_v32, %v6408_v43  ;;  %v3308_v2 = vpop.f32.mrb[46].mxu0  ;;  %3584 = vmatprep.mubr.bf16.mxu1 %v3390_v29 }
 0x2e0   : > { %v4448_v18 = vadd.f32 %v3308_v2, %v6404_v38  ;;  %v3310_v62 = vpop.f32.mrb[47].mxu0  ;;  %3585 = vmatmul.mubr.bf16.vlgmr.msra.gmra.mrb[64].mxu1 %v3389_v4  ;;  %v3365_v1 = vmax.f32 %v4446_v14, 0.0 }
 0x2e1   : > { %v4449_v39 = vadd.f32 %v3310_v62, %v6408_v43  ;;  %4291 = vmatpush3.bf16.msra.mxu1 %v5074_v19  ;;  %v3366_v53 = vmax.f32 %v4447_v33, 0.0 }
 0x2e2   : > { %v3367_v35 = vmax.f32 %v4448_v18, 0.0  ;;  %4292 = vmatprep.subr.bf16.mxu1 %v5075_v31 }
 0x2e3   : > { %v3368_v0 = vmax.f32 %v4449_v39, 0.0 }
 0x2e4   : > { %v3391_v34 = vpack.c.bf16 %v3367_v35, %v3365_v1  ;;  %v5077_v35 = vld [vmem:[%s6519_s7 + $0x18] sm:$0xff]  }
 0x2e5   : > { %v3392_v45 = vpack.c.bf16 %v3368_v0, %v3366_v53  ;;  %v3314_v40 = vpop.f32.mrb[48].mxu0  ;;  %4293 = vmatpush3.bf16.msra.mxu1 %v5075_v31  ;;  %v5081_v53 = vld [vmem:[%s6519_s7 + $0x38] sm:$0xff]  }
 0x2e6   : > { %v4450_v60 = vadd.f32 %v3314_v40, %v6404_v38  ;;  %v3316_v21 = vpop.f32.mrb[49].mxu0  ;;  %4294 = vmatprep.subr.bf16.mxu1 %v5076_v36 }
 0x2e7   : > { %v4451_v46 = vadd.f32 %v3316_v21, %v6408_v43  ;;  %v3318_v19 = vpop.f32.mrb[50].mxu0  ;;  %3592 = vmatprep.mubr.bf16.mxu1 %v3392_v45 }
 0x2e8   : > { %v4452_v48 = vadd.f32 %v3318_v19, %v6404_v38  ;;  %v3320_v49 = vpop.f32.mrb[51].mxu0  ;;  %3593 = vmatmul.mubr.bf16.gmra.mrb[68].mxu1 %v3391_v34  ;;  %v3369_v51 = vmax.f32 %v4450_v60, 0.0  ;;  %v6466_v34 = vld [vmem:[%s6518_s6] ss:$0 sm:$0xff] }
 0x2e9   : > { %v4453_v9 = vadd.f32 %v3320_v49, %v6408_v43  ;;  %4295 = vmatpush3.bf16.msra.mxu1 %v5076_v36  ;;  %v3370_v12 = vmax.f32 %v4451_v46, 0.0  ;;  %v5080_v36 = vld [vmem:[%s6519_s7 + $0x30] sm:$0xff]  }
 0x2ea   : > { %v3371_v11 = vmax.f32 %v4452_v48, 0.0  ;;  %4296 = vmatprep.subr.bf16.mxu1 %v5077_v35 }
 0x2eb   : > { %v3372_v52 = vmax.f32 %v4453_v9, 0.0 }
 0x2ec   : > { %v3393_v54 = vpack.c.bf16 %v3371_v11, %v3369_v51 }
 0x2ed   : > { %v3394_v13 = vpack.c.bf16 %v3372_v52, %v3370_v12  ;;  %v3324_v56 = vpop.f32.mrb[52].mxu0  ;;  %4297 = vmatpush3.bf16.msra.mxu1 %v5077_v35 }
 0x2ee   : > { %v4454_v42 = vadd.f32 %v3324_v56, %v6404_v38  ;;  %v3326_v55 = vpop.f32.mrb[53].mxu0 }
 0x2ef   : > { %v4455_v41 = vadd.f32 %v3326_v55, %v6408_v43  ;;  %v3328_v7 = vpop.f32.mrb[54].mxu0  ;;  %3600 = vmatprep.mubr.bf16.mxu1 %v3394_v13 }
 0x2f0   : > { %v4456_v22 = vadd.f32 %v3328_v7, %v6404_v38  ;;  %v3330_v57 = vpop.f32.mrb[55].mxu0  ;;  %3601 = vmatmul.mubr.bf16.gmra.mrb[72].mxu1 %v3393_v54  ;;  %v3373_v24 = vmax.f32 %v4454_v42, 0.0 }
 0x2f1   : > { %v4457_v58 = vadd.f32 %v3330_v57, %v6408_v43  ;;  %v3374_v15 = vmax.f32 %v4455_v41, 0.0 }
 0x2f2   : > { %v3375_v44 = vmax.f32 %v4456_v22, 0.0 }
 0x2f3   : > { %v3376_v61 = vmax.f32 %v4457_v58, 0.0 }
 0x2f4   : > { %v3395_v63 = vpack.c.bf16 %v3375_v44, %v3373_v24 }
 0x2f5   : > { %v3396_v25 = vpack.c.bf16 %v3376_v61, %v3374_v15  ;;  %v3334_v16 = vpop.f32.mrb[56].mxu0 }
 0x2f6   : > { %v4458_v8 = vadd.f32 %v3334_v16, %v6404_v38  ;;  %v3336_v26 = vpop.f32.mrb[57].mxu0 }
 0x2f7   : > { %v4459_v3 = vadd.f32 %v3336_v26, %v6408_v43  ;;  %v3338_v5 = vpop.f32.mrb[58].mxu0  ;;  %3608 = vmatprep.mubr.bf16.mxu1 %v3396_v25 }
 0x2f8   : > { %v4460_v6 = vadd.f32 %v3338_v5, %v6404_v38  ;;  %v3340_v28 = vpop.f32.mrb[59].mxu0  ;;  %3609 = vmatmul.mubr.bf16.gmra.mrb[76].mxu1 %v3395_v63  ;;  %v3377_v27 = vmax.f32 %v4458_v8, 0.0 }
 0x2f9   : > { %v4461_v10 = vadd.f32 %v3340_v28, %v6408_v43  ;;  %v3378_v37 = vmax.f32 %v4459_v3, 0.0 }
 0x2fa   : > { %v3379_v23 = vmax.f32 %v4460_v6, 0.0 }
 0x2fb   : > { %v3380_v47 = vmax.f32 %v4461_v10, 0.0 }
 0x2fc   : > { %v3397_v59 = vpack.c.bf16 %v3379_v23, %v3377_v27 }
 0x2fd   : > { %v3398_v50 = vpack.c.bf16 %v3380_v47, %v3378_v37  ;;  %v3344_v30 = vpop.f32.mrb[60].mxu0 }
 0x2fe   : > { %v4462_v17 = vadd.f32 %v3344_v30, %v6404_v38  ;;  %v3346_v4 = vpop.f32.mrb[61].mxu0 }
 0x2ff   : > { %v4463_v29 = vadd.f32 %v3346_v4, %v6408_v43  ;;  %v3348_v20 = vpop.f32.mrb[62].mxu0  ;;  %3616 = vmatprep.mubr.bf16.mxu1 %v3398_v50 }
 0x300   : > { %v4464_v14 = vadd.f32 %v3348_v20, %v6404_v38  ;;  %v3350_v32 = vpop.f32.mrb[63].mxu0  ;;  %3617 = vmatmul.mubr.bf16.gmra.mrb[80].mxu1 %v3397_v59  ;;  %v3381_v33 = vmax.f32 %v4462_v17, 0.0  ;;  %v5078_v38 = vld [vmem:[%s6519_s7 + $0x20] sm:$0xff]  }
 0x301   : > { %v4465_v31 = vadd.f32 %v3350_v32, %v6408_v43  ;;  %v3382_v18 = vmax.f32 %v4463_v29, 0.0  ;;  %4298 = vmatprep.subr.bf16.mxu1 %v5078_v38  ;;  %v5079_v43 = vld [vmem:[%s6519_s7 + $0x28] sm:$0xff]  }
 0x302   : > { %v3383_v2 = vmax.f32 %v4464_v14, 0.0  ;;  %4299 = vmatpush3.bf16.msra.mxu1 %v5078_v38 }
 0x303   : > { %v3384_v62 = vmax.f32 %v4465_v31, 0.0  ;;  %4300 = vmatprep.subr.bf16.mxu1 %v5079_v43 }
 0x304   : > { %v3399_v39 = vpack.c.bf16 %v3383_v2, %v3381_v33 }
 0x305   : > { %v3400_v1 = vpack.c.bf16 %v3384_v62, %v3382_v18 }
 0x306   : > { %4301 = vmatpush3.bf16.msra.mxu1 %v5079_v43 }
 0x307   : > { %3624 = vmatprep.mubr.bf16.mxu1 %v3400_v1  ;;  %4302 = vmatprep.subr.bf16.mxu1 %v5080_v36 }
 0x308   : > { %3625 = vmatmul.mubr.bf16.gmra.mrb[84].mxu1 %v3399_v39 }
 0x30a   : > { %4303 = vmatpush3.bf16.msra.mxu1 %v5080_v36 }
 0x30b   : > { %4304 = vmatprep.subr.bf16.mxu1 %v5081_v53 }
 0x30e   : > { %4305 = vmatpush3.bf16.msra.mxu1 %v5081_v53 }
 0x3a3   : > { %v4226_v0 = vpop.f32.mrb[64].mxu0 }
 0x3a4   : > { %v4227_v45 = vpop.f32.mrb[65].mxu0 }
 0x3a5   : > { %v4228_v40 = vadd.f32 %v4227_v45, %v4226_v0  ;;  %v4229_v60 = vpop.f32.mrb[66].mxu0 }
 0x3a6   : > { %v4230_v21 = vpop.f32.mrb[67].mxu0 }
 0x3a7   : > { %v3571_v46 = vadd.f32 %v4228_v40, %v6466_v34  ;;  %v4231_v19 = vadd.f32 %v4230_v21, %v4229_v60 }
 0x3a9   : > { %v3574_v48 = vadd.f32 %v4231_v19, %v6466_v34  ;;  %v3633_v49 = vmax.f32 %v3571_v46, 0.0 }
 0x3ab   : > { %v3634_v9 = vmax.f32 %v3574_v48, 0.0  ;;  %v4232_v51 = vpop.f32.mrb[68].mxu0 }
 0x3ac   : > { %v4233_v11 = vpop.f32.mrb[69].mxu0 }
 0x3ad   : > { %v4234_v12 = vadd.f32 %v4233_v11, %v4232_v51  ;;  %v4235_v52 = vpop.f32.mrb[70].mxu0  ;;  %v3649_v54 = vpack.c.bf16 %v3634_v9, %v3633_v49 }
 0x3ae   : > { %v4236_v13 = vpop.f32.mrb[71].mxu0 }
 0x3af   : > { %v3579_v56 = vadd.f32 %v4234_v12, %v6466_v34  ;;  %v4237_v42 = vadd.f32 %v4236_v13, %v4235_v52  ;;  %4306 = vmatprep.mubr.bf16.mxu1 %v3649_v54 }
 0x3b1   : > { %v3582_v55 = vadd.f32 %v4237_v42, %v6466_v34  ;;  %v3635_v41 = vmax.f32 %v3579_v56, 0.0 }
 0x3b3   : > { %v3636_v7 = vmax.f32 %v3582_v55, 0.0  ;;  %v4238_v22 = vpop.f32.mrb[64].mxu1 }
 0x3b4   : > { %v4239_v57 = vpop.f32.mrb[65].mxu1 }
 0x3b5   : > { %v3650_v58 = vpack.c.bf16 %v3636_v7, %v3635_v41  ;;  %v4240_v24 = vadd.f32 %v4239_v57, %v4238_v22  ;;  %v4241_v44 = vpop.f32.mrb[66].mxu1 }
 0x3b6   : > { %v4242_v15 = vpop.f32.mrb[67].mxu1 }
 0x3b7   : > { %v3587_v61 = vadd.f32 %v4240_v24, %v6466_v34  ;;  %v4243_v63 = vadd.f32 %v4242_v15, %v4241_v44  ;;  %4307 = vmatmul.mubr.bf16.vlgmr.msra.gmra.mrb[88].mxu1 %v3650_v58  ;;  %v4199_v44 = vld [vmem:[%s6520_s8] ss:$0 sm:$0xff] }
 0x3b9   : > { %v3590_v25 = vadd.f32 %v4243_v63, %v6466_v34  ;;  %v3637_v16 = vmax.f32 %v3587_v61, 0.0 }
 0x3bb   : > { %v3638_v8 = vmax.f32 %v3590_v25, 0.0  ;;  %v4244_v26 = vpop.f32.mrb[68].mxu1 }
 0x3bc   : > { %v4245_v3 = vpop.f32.mrb[69].mxu1 }
 0x3bd   : > { %v4246_v5 = vadd.f32 %v4245_v3, %v4244_v26  ;;  %v4247_v6 = vpop.f32.mrb[70].mxu1  ;;  %v3651_v28 = vpack.c.bf16 %v3638_v8, %v3637_v16 }
 0x3be   : > { %v4248_v10 = vpop.f32.mrb[71].mxu1 }
 0x3bf   : > { %v3595_v27 = vadd.f32 %v4246_v5, %v6466_v34  ;;  %v4249_v23 = vadd.f32 %v4248_v10, %v4247_v6  ;;  %4310 = vmatprep.mubr.bf16.mxu1 %v3651_v28 }
 0x3c1   : > { %v3598_v37 = vadd.f32 %v4249_v23, %v6466_v34  ;;  %v3639_v47 = vmax.f32 %v3595_v27, 0.0 }
 0x3c3   : > { %v3640_v59 = vmax.f32 %v3598_v37, 0.0  ;;  %v4250_v50 = vpop.f32.mrb[72].mxu1 }
 0x3c4   : > { %v4251_v30 = vpop.f32.mrb[73].mxu1 }
 0x3c5   : > { %v4252_v17 = vadd.f32 %v4251_v30, %v4250_v50  ;;  %v4253_v4 = vpop.f32.mrb[74].mxu1  ;;  %v3652_v29 = vpack.c.bf16 %v3640_v59, %v3639_v47 }
 0x3c6   : > { %v4254_v20 = vpop.f32.mrb[75].mxu1 }
 0x3c7   : > { %v3603_v14 = vadd.f32 %v4252_v17, %v6466_v34  ;;  %v4255_v32 = vadd.f32 %v4254_v20, %v4253_v4  ;;  %4311 = vmatmul.mubr.bf16.gmra.mrb[92].mxu1 %v3652_v29 }
 0x3c9   : > { %v3606_v31 = vadd.f32 %v4255_v32, %v6466_v34  ;;  %v3641_v33 = vmax.f32 %v3603_v14, 0.0 }
 0x3cb   : > { %v3642_v2 = vmax.f32 %v3606_v31, 0.0  ;;  %v4256_v18 = vpop.f32.mrb[76].mxu1 }
 0x3cc   : > { %v4257_v62 = vpop.f32.mrb[77].mxu1 }
 0x3cd   : > { %v4258_v39 = vadd.f32 %v4257_v62, %v4256_v18  ;;  %v4259_v1 = vpop.f32.mrb[78].mxu1  ;;  %v3653_v35 = vpack.c.bf16 %v3642_v2, %v3641_v33 }
 0x3ce   : > { %v4260_v38 = vpop.f32.mrb[79].mxu1 }
 0x3cf   : > { %v3611_v43 = vadd.f32 %v4258_v39, %v6466_v34  ;;  %v4261_v36 = vadd.f32 %v4260_v38, %v4259_v1  ;;  %4314 = vmatprep.mubr.bf16.mxu1 %v3653_v35 }
 0x3d1   : > { %v3614_v53 = vadd.f32 %v4261_v36, %v6466_v34  ;;  %v3643_v0 = vmax.f32 %v3611_v43, 0.0 }
 0x3d3   : > { %v3644_v45 = vmax.f32 %v3614_v53, 0.0  ;;  %v4262_v40 = vpop.f32.mrb[80].mxu1 }
 0x3d4   : > { %v4263_v60 = vpop.f32.mrb[81].mxu1 }
 0x3d5   : > { %v4264_v21 = vadd.f32 %v4263_v60, %v4262_v40  ;;  %v4265_v46 = vpop.f32.mrb[82].mxu1  ;;  %v3654_v19 = vpack.c.bf16 %v3644_v45, %v3643_v0 }
 0x3d6   : > { %v4266_v48 = vpop.f32.mrb[83].mxu1 }
 0x3d7   : > { %v3619_v49 = vadd.f32 %v4264_v21, %v6466_v34  ;;  %v4267_v9 = vadd.f32 %v4266_v48, %v4265_v46  ;;  %4315 = vmatmul.mubr.bf16.gmra.mrb[96].mxu1 %v3654_v19 }
 0x3d9   : > { %v3622_v51 = vadd.f32 %v4267_v9, %v6466_v34  ;;  %v3645_v11 = vmax.f32 %v3619_v49, 0.0 }
 0x3db   : > { %v3646_v12 = vmax.f32 %v3622_v51, 0.0  ;;  %v4268_v52 = vpop.f32.mrb[84].mxu1 }
 0x3dc   : > { %v4269_v54 = vpop.f32.mrb[85].mxu1 }
 0x3dd   : > { %v4270_v13 = vadd.f32 %v4269_v54, %v4268_v52  ;;  %v4271_v56 = vpop.f32.mrb[86].mxu1  ;;  %v3655_v42 = vpack.c.bf16 %v3646_v12, %v3645_v11 }
 0x3de   : > { %v4272_v55 = vpop.f32.mrb[87].mxu1 }
 0x3df   : > { %v3627_v41 = vadd.f32 %v4270_v13, %v6466_v34  ;;  %v4273_v7 = vadd.f32 %v4272_v55, %v4271_v56  ;;  %4318 = vmatprep.mubr.bf16.mxu1 %v3655_v42 }
 0x3e1   : > { %v3630_v22 = vadd.f32 %v4273_v7, %v6466_v34  ;;  %v3647_v57 = vmax.f32 %v3627_v41, 0.0 }
 0x3e3   : > { %v3648_v58 = vmax.f32 %v3630_v22, 0.0 }
 0x3e5   : > { %v3656_v24 = vpack.c.bf16 %v3648_v58, %v3647_v57 }
 0x3e7   : > { %4319 = vmatmul.mubr.bf16.gmra.mrb[100].mxu1 %v3656_v24 }
 0x48a   : > { %v4308_v15 = vpop.f32.mrb[88].mxu1 }
 0x48b   : > { %v3771_v34 = vadd.f32 %v4308_v15, %v4199_v44  ;;  %v3762_v61 = vpop.f32.mrb[89].mxu1 }
 0x48c   : > { %v3763_v63 = vadd.f32 %v4199_v44, %v3762_v61  ;;  %v4309_v25 = vpop.f32.mrb[90].mxu1 }
 0x48d   : > { %3827 = vst [vmem:[%s6491_s28 + $0x10] sm:$0xff] %v3771_v34  ;;  %v3774_v16 = vadd.f32 %v4309_v25, %v4199_v44  ;;  %v3765_v8 = vpop.f32.mrb[91].mxu1 }
 0x48e   : > { %3825 = vst [vmem:[%s6491_s28] sm:$0xff] %v3763_v63  ;;  %v3766_v26 = vadd.f32 %v4199_v44, %v3765_v8 }
 0x48f   : > { %3828 = vst [vmem:[%s6491_s28 + $0x18] sm:$0xff] %v3774_v16 }
 0x490   : > { %3826 = vst [vmem:[%s6491_s28 + $0x8] sm:$0xff] %v3766_v26 }
 0x49a   : > { %v4312_v3 = vpop.f32.mrb[92].mxu1 }
 0x49b   : > { %v3787_v5 = vadd.f32 %v4312_v3, %v4199_v44  ;;  %v3778_v6 = vpop.f32.mrb[93].mxu1 }
 0x49c   : > { %v3779_v28 = vadd.f32 %v4199_v44, %v3778_v6  ;;  %v4313_v10 = vpop.f32.mrb[94].mxu1 }
 0x49d   : > { %3831 = vst [vmem:[%s6491_s28 + $0x30] sm:$0xff] %v3787_v5  ;;  %v3790_v27 = vadd.f32 %v4313_v10, %v4199_v44  ;;  %v3781_v23 = vpop.f32.mrb[95].mxu1 }
 0x49e   : > { %3829 = vst [vmem:[%s6491_s28 + $0x20] sm:$0xff] %v3779_v28  ;;  %v3782_v37 = vadd.f32 %v4199_v44, %v3781_v23 }
 0x49f   : > { %3832 = vst [vmem:[%s6491_s28 + $0x38] sm:$0xff] %v3790_v27 }
 0x4a0   : > { %3830 = vst [vmem:[%s6491_s28 + $0x28] sm:$0xff] %v3782_v37 }
 0x4aa   : > { %v4316_v47 = vpop.f32.mrb[96].mxu1 }
 0x4ab   : > { %v3803_v59 = vadd.f32 %v4316_v47, %v4199_v44  ;;  %v3794_v50 = vpop.f32.mrb[97].mxu1 }
 0x4ac   : > { %v3795_v30 = vadd.f32 %v4199_v44, %v3794_v50  ;;  %v4317_v17 = vpop.f32.mrb[98].mxu1 }
 0x4ad   : > { %3835 = vst [vmem:[%s6491_s28 + $0x50] sm:$0xff] %v3803_v59  ;;  %v3806_v4 = vadd.f32 %v4317_v17, %v4199_v44  ;;  %v3797_v29 = vpop.f32.mrb[99].mxu1 }
 0x4ae   : > { %3833 = vst [vmem:[%s6491_s28 + $0x40] sm:$0xff] %v3795_v30  ;;  %v3798_v20 = vadd.f32 %v4199_v44, %v3797_v29 }
 0x4af   : > { %3836 = vst [vmem:[%s6491_s28 + $0x58] sm:$0xff] %v3806_v4 }
 0x4b0   : > { %3834 = vst [vmem:[%s6491_s28 + $0x48] sm:$0xff] %v3798_v20 }
 0x4ba   : > { %v4320_v14 = vpop.f32.mrb[100].mxu1 }
 0x4bb   : > { %v3819_v32 = vadd.f32 %v4320_v14, %v4199_v44  ;;  %v3810_v31 = vpop.f32.mrb[101].mxu1 }
 0x4bc   : > { %v3811_v33 = vadd.f32 %v4199_v44, %v3810_v31  ;;  %v4321_v2 = vpop.f32.mrb[102].mxu1 }
 0x4bd   : > { %3839 = vst [vmem:[%s6491_s28 + $0x70] sm:$0xff] %v3819_v32  ;;  %v3822_v18 = vadd.f32 %v4321_v2, %v4199_v44  ;;  %v3813_v62 = vpop.f32.mrb[103].mxu1 }
 0x4be   : > { %3837 = vst [vmem:[%s6491_s28 + $0x60] sm:$0xff] %v3811_v33  ;;  %v3814_v39 = vadd.f32 %v4199_v44, %v3813_v62 }
 0x4bf   : > { %3840 = vst [vmem:[%s6491_s28 + $0x78] sm:$0xff] %v3822_v18 }
 0x4c0   : > { %3838 = vst [vmem:[%s6491_s28 + $0x68] sm:$0xff] %v3814_v39 }
 0x4c1 PF: > { %s19_s30 = sadd.s32 1, %s5088_s30  }
 0x4c2   : > { %p16_p4 = scmp.ge.s32.totalorder %s19_s30, 4  }
 0x4c4   :  { %18 = sbr.rel (!%p16_p4) target bundleno = 1 (0x1), region = 86 }

</bundles_post_ra>
